<compile_context>
chip_gen: v7x
topology: tpu7x:2x2x1
jax: 0.10.0
libtpu: 0.0.40
codegen_flags: <defaults>
</compile_context>

<pallas_src>
import functools

import jax
import jax.numpy as jnp
from jax.experimental import pallas as pl
from jax.experimental.pallas import tpu as pltpu

KS = 7
PAD = KS // 2


def spatial_attention_kernel(w_ref, col_ref, x_ref, o_ref, *, H, W):
    # w_ref:   (2*KS*KS,) conv weights in SMEM (scalar-prefetched, OIHW order)
    # col_ref: (1, H*W) int32 column index of each flattened pixel (VMEM)
    # x_ref:   (1, C, H*W) block in VMEM ; o_ref: (1, C, H*W)
    C = x_ref.shape[1]
    HW = H * W

    # ---- fused single-pass channel sum + channel max (one read of x) ----
    def reduce_body(c, carry):
        s, m = carry
        row = x_ref[0, pl.ds(c, 1), :].astype(jnp.float32)   # (1, HW)
        return s + row, jnp.maximum(m, row)

    s0 = jnp.zeros((1, HW), jnp.float32)
    m0 = jnp.full((1, HW), -jnp.inf, jnp.float32)
    ch_sum, ch_max = jax.lax.fori_loop(0, C, reduce_body, (s0, m0))
    ch_avg = ch_sum * (1.0 / C)

    # ---- 7x7 conv (2 -> 1 channels, "same" zero padding, no bias) ----
    # Tap (ki, kj) is a flat shift by (ki-PAD)*W + (kj-PAD) on the (1, HW)
    # layout.  Row shifts (multiples of W) and column shifts are lane rolls;
    # out-of-image contributions are removed with iota / column-index masks.
    idx = jax.lax.broadcasted_iota(jnp.int32, (1, HW), 1)     # flat pixel index
    col = col_ref[...]                                        # pixel column

    acc = jnp.zeros((1, HW), jnp.float32)
    feats = (ch_avg, ch_max)
    for c in range(2):
        feat = feats[c]
        # Row-shifted + row-masked copies, one per ki; reused across all kj.
        rows = []
        for ki in range(KS):
            dr = ki - PAD
            if dr == 0:
                rows.append(feat)
                continue
            shifted = pltpu.roll(feat, (-dr * W) % HW, 1)
            lo = max(0, -dr) * W
            hi = min(H, H - dr) * W
            rmask = (idx >= lo) & (idx < hi)
            rows.append(jnp.where(rmask, shifted, 0.0))
        # One column roll per kj, shared by all 7 ki taps of this channel.
        for kj in range(KS):
            dc = kj - PAD
            b = jnp.zeros((1, HW), jnp.float32)
            for ki in range(KS):
                b = b + w_ref[c * KS * KS + ki * KS + kj] * rows[ki]
            if dc == 0:
                acc = acc + b
            else:
                b = pltpu.roll(b, (-dc) % HW, 1)
                cmask = (col + dc >= 0) & (col + dc < W)
                acc = acc + jnp.where(cmask, b, 0.0)

    att = jax.nn.sigmoid(acc).astype(o_ref.dtype)             # (1, HW)

    # ---- lane-dense rescale + store (second and last read of x) ----
    o_ref[0] = (x_ref[0] * att).astype(o_ref.dtype)


def spatial_attention(x, w):
    """x: (B, C, H, W), w: (1, 2, KS, KS) conv weight (OIHW, no bias)."""
    B, C, H, W = x.shape
    HW = H * W

    x_flat = x.reshape(B, C, HW)                       # lane-dense spatial axis
    w_flat = w.reshape(-1).astype(jnp.float32)         # (2*KS*KS,)
    col_id = (jnp.arange(HW, dtype=jnp.int32) % W).reshape(1, HW)

    kernel = functools.partial(spatial_attention_kernel, H=H, W=W)

    # Explicit VMEM budget: double-buffered input + output blocks + headroom.
    blk_bytes = C * HW * x.dtype.itemsize
    vmem_limit = int(min(100 * 1024 * 1024, 4 * blk_bytes + (8 << 20)))

    grid_spec = pltpu.PrefetchScalarGridSpec(
        num_scalar_prefetch=1,
        grid=(B,),
        in_specs=[
            pl.BlockSpec((1, HW), lambda b, w_s: (0, 0)),        # col_id
            pl.BlockSpec((1, C, HW), lambda b, w_s: (b, 0, 0)),  # x
        ],
        out_specs=pl.BlockSpec((1, C, HW), lambda b, w_s: (b, 0, 0)),
    )
    out = pl.pallas_call(
        kernel,
        out_shape=jax.ShapeDtypeStruct((B, C, HW), x.dtype),
        grid_spec=grid_spec,
        compiler_params=pltpu.CompilerParams(
            dimension_semantics=("parallel",),
            vmem_limit_bytes=vmem_limit),
    )(w_flat, col_id, x_flat)
    return out.reshape(B, C, H, W)


def spatial_attention_ref(x, w):
    """Pure-JAX reference matching the PyTorch module."""
    avg = jnp.mean(x, axis=1, keepdims=True)
    mx = jnp.max(x, axis=1, keepdims=True)
    cat = jnp.concatenate([avg, mx], axis=1)
    logits = jax.lax.conv_general_dilated(
        cat, w, window_strides=(1, 1),
        padding=[(PAD, PAD), (PAD, PAD)],
        dimension_numbers=("NCHW", "OIHW", "NCHW"))
    return x * jax.nn.sigmoid(logits)


if __name__ == "__main__":
    key = jax.random.PRNGKey(0)
    kx, kw = jax.random.split(key)

    B, C, H, W = 2, 4, 16, 16
    x = jax.random.normal(kx, (B, C, H, W), dtype=jnp.float32)

    # Deterministic conv weight init (PyTorch kaiming_uniform-like bound 1/sqrt(fan_in))
    fan_in = 2 * KS * KS
    bound = 1.0 / jnp.sqrt(jnp.float32(fan_in))
    w = jax.random.uniform(kw, (1, 2, KS, KS), dtype=jnp.float32,
                           minval=-bound, maxval=bound)

    out = spatial_attention(x, w)
    out = jax.block_until_ready(out)

    ref = spatial_attention_ref(x, w)
    assert out.shape == (B, C, H, W)
    assert jnp.allclose(out, ref, atol=1e-5, rtol=1e-5), "mismatch vs reference"

    print("KERNEL_OK")
</pallas_src>

<mosaic_0001>
module attributes {stable_mosaic.version = 11 : i64} {
  func.func @spatial_attention_kernel(%arg0: i32, %arg1: memref<98xf32, #tpu.memory_space<smem>>, %arg2: memref<1x256xi32, #tpu.memory_space<vmem>>, %arg3: memref<1x4x256xf32, #tpu.memory_space<vmem>>, %arg4: memref<1x4x256xf32, #tpu.memory_space<vmem>>) attributes {dimension_semantics = [#tpu.dimension_semantics<parallel>], iteration_bounds = array<i64: 2>, scalar_prefetch = 1 : i64, scratch_operands = 0 : i64, tpu.core_type = #tpu.core_type<tc>, window_params = [{pipeline_mode = #tpu.pipeline_mode<synchronous>, transform_indices = @transform_0, window_bounds = array<i64: 1, 256>}, {transform_indices = @transform_1, window_bounds = array<i64: 1, 4, 256>}, {transform_indices = @transform_2, window_bounds = array<i64: 1, 4, 256>}]} {
    %cst = arith.constant 0.000000e+00 : f32
    %0 = vector.broadcast %cst : f32 to vector<1x256xf32>
    %cst_0 = arith.constant 0xFF800000 : f32
    %1 = vector.broadcast %cst_0 : f32 to vector<1x256xf32>
    %c0_i32 = arith.constant 0 : i32
    %c4_i32 = arith.constant 4 : i32
    %2 = arith.addi %c0_i32, %c4_i32 : i32
    %c1_i32 = arith.constant 1 : i32
    %3:2 = scf.for %arg5 = %c0_i32 to %2 step %c1_i32 iter_args(%arg6 = %0, %arg7 = %1) -> (vector<1x256xf32>, vector<1x256xf32>)  : i32 {
      %c0_132 = arith.constant 0 : index
      %681 = arith.index_cast %arg5 : i32 to index
      %c0_133 = arith.constant 0 : index
      %682 = vector.load %arg3[%c0_132, %681, %c0_133] : memref<1x4x256xf32, #tpu.memory_space<vmem>>, vector<1x1x256xf32>
      %683 = vector.shape_cast %682 : vector<1x1x256xf32> to vector<1x256xf32>
      %684 = arith.addf %arg6, %683 : vector<1x256xf32>
      %685 = arith.maximumf %arg7, %683 : vector<1x256xf32>
      scf.yield %684, %685 : vector<1x256xf32>, vector<1x256xf32>
    }
    %c4_i32_1 = arith.constant 4 : i32
    %cst_2 = arith.constant 2.500000e-01 : f32
    %4 = vector.broadcast %cst_2 : f32 to vector<1x256xf32>
    %5 = arith.mulf %3#0, %4 : vector<1x256xf32>
    %6 = tpu.iota {dimensions = array<i32: 1>} : vector<1x256xi32>
    %c0 = arith.constant 0 : index
    %c0_3 = arith.constant 0 : index
    %7 = vector.load %arg2[%c0, %c0_3] : memref<1x256xi32, #tpu.memory_space<vmem>>, vector<1x256xi32>
    %cst_4 = arith.constant 0.000000e+00 : f32
    %8 = vector.broadcast %cst_4 : f32 to vector<1x256xf32>
    %c48_i32 = arith.constant 48 : i32
    %9 = tpu.dynamic_rotate %5 by %c48_i32 dim 1 : vector<1x256xf32>, i32 -> vector<1x256xf32>
    %c48_i32_5 = arith.constant 48 : i32
    %10 = vector.broadcast %c48_i32_5 : i32 to vector<1x256xi32>
    %11 = arith.cmpi sge, %6, %10 : vector<1x256xi32>
    %c256_i32 = arith.constant 256 : i32
    %12 = vector.broadcast %c256_i32 : i32 to vector<1x256xi32>
    %13 = arith.cmpi slt, %6, %12 : vector<1x256xi32>
    %14 = arith.andi %11, %13 : vector<1x256xi1>
    %cst_6 = arith.constant 0.000000e+00 : f32
    %15 = vector.broadcast %cst_6 : f32 to vector<1x256xf32>
    %16 = arith.select %14, %9, %15 : vector<1x256xi1>, vector<1x256xf32>
    %c32_i32 = arith.constant 32 : i32
    %17 = tpu.dynamic_rotate %5 by %c32_i32 dim 1 : vector<1x256xf32>, i32 -> vector<1x256xf32>
    %c32_i32_7 = arith.constant 32 : i32
    %18 = vector.broadcast %c32_i32_7 : i32 to vector<1x256xi32>
    %19 = arith.cmpi sge, %6, %18 : vector<1x256xi32>
    %c256_i32_8 = arith.constant 256 : i32
    %20 = vector.broadcast %c256_i32_8 : i32 to vector<1x256xi32>
    %21 = arith.cmpi slt, %6, %20 : vector<1x256xi32>
    %22 = arith.andi %19, %21 : vector<1x256xi1>
    %cst_9 = arith.constant 0.000000e+00 : f32
    %23 = vector.broadcast %cst_9 : f32 to vector<1x256xf32>
    %24 = arith.select %22, %17, %23 : vector<1x256xi1>, vector<1x256xf32>
    %c16_i32 = arith.constant 16 : i32
    %25 = tpu.dynamic_rotate %5 by %c16_i32 dim 1 : vector<1x256xf32>, i32 -> vector<1x256xf32>
    %c16_i32_10 = arith.constant 16 : i32
    %26 = vector.broadcast %c16_i32_10 : i32 to vector<1x256xi32>
    %27 = arith.cmpi sge, %6, %26 : vector<1x256xi32>
    %c256_i32_11 = arith.constant 256 : i32
    %28 = vector.broadcast %c256_i32_11 : i32 to vector<1x256xi32>
    %29 = arith.cmpi slt, %6, %28 : vector<1x256xi32>
    %30 = arith.andi %27, %29 : vector<1x256xi1>
    %cst_12 = arith.constant 0.000000e+00 : f32
    %31 = vector.broadcast %cst_12 : f32 to vector<1x256xf32>
    %32 = arith.select %30, %25, %31 : vector<1x256xi1>, vector<1x256xf32>
    %c240_i32 = arith.constant 240 : i32
    %33 = tpu.dynamic_rotate %5 by %c240_i32 dim 1 : vector<1x256xf32>, i32 -> vector<1x256xf32>
    %c0_i32_13 = arith.constant 0 : i32
    %34 = vector.broadcast %c0_i32_13 : i32 to vector<1x256xi32>
    %35 = arith.cmpi sge, %6, %34 : vector<1x256xi32>
    %c240_i32_14 = arith.constant 240 : i32
    %36 = vector.broadcast %c240_i32_14 : i32 to vector<1x256xi32>
    %37 = arith.cmpi slt, %6, %36 : vector<1x256xi32>
    %38 = arith.andi %35, %37 : vector<1x256xi1>
    %cst_15 = arith.constant 0.000000e+00 : f32
    %39 = vector.broadcast %cst_15 : f32 to vector<1x256xf32>
    %40 = arith.select %38, %33, %39 : vector<1x256xi1>, vector<1x256xf32>
    %c224_i32 = arith.constant 224 : i32
    %41 = tpu.dynamic_rotate %5 by %c224_i32 dim 1 : vector<1x256xf32>, i32 -> vector<1x256xf32>
    %c0_i32_16 = arith.constant 0 : i32
    %42 = vector.broadcast %c0_i32_16 : i32 to vector<1x256xi32>
    %43 = arith.cmpi sge, %6, %42 : vector<1x256xi32>
    %c224_i32_17 = arith.constant 224 : i32
    %44 = vector.broadcast %c224_i32_17 : i32 to vector<1x256xi32>
    %45 = arith.cmpi slt, %6, %44 : vector<1x256xi32>
    %46 = arith.andi %43, %45 : vector<1x256xi1>
    %cst_18 = arith.constant 0.000000e+00 : f32
    %47 = vector.broadcast %cst_18 : f32 to vector<1x256xf32>
    %48 = arith.select %46, %41, %47 : vector<1x256xi1>, vector<1x256xf32>
    %c208_i32 = arith.constant 208 : i32
    %49 = tpu.dynamic_rotate %5 by %c208_i32 dim 1 : vector<1x256xf32>, i32 -> vector<1x256xf32>
    %c0_i32_19 = arith.constant 0 : i32
    %50 = vector.broadcast %c0_i32_19 : i32 to vector<1x256xi32>
    %51 = arith.cmpi sge, %6, %50 : vector<1x256xi32>
    %c208_i32_20 = arith.constant 208 : i32
    %52 = vector.broadcast %c208_i32_20 : i32 to vector<1x256xi32>
    %53 = arith.cmpi slt, %6, %52 : vector<1x256xi32>
    %54 = arith.andi %51, %53 : vector<1x256xi1>
    %cst_21 = arith.constant 0.000000e+00 : f32
    %55 = vector.broadcast %cst_21 : f32 to vector<1x256xf32>
    %56 = arith.select %54, %49, %55 : vector<1x256xi1>, vector<1x256xf32>
    %cst_22 = arith.constant 0.000000e+00 : f32
    %57 = vector.broadcast %cst_22 : f32 to vector<1x256xf32>
    %c0_23 = arith.constant 0 : index
    %58 = memref.load %arg1[%c0_23] : memref<98xf32, #tpu.memory_space<smem>>
    %59 = vector.broadcast %58 : f32 to vector<1x256xf32>
    %60 = arith.mulf %59, %16 : vector<1x256xf32>
    %61 = arith.addf %57, %60 : vector<1x256xf32>
    %c7 = arith.constant 7 : index
    %62 = memref.load %arg1[%c7] : memref<98xf32, #tpu.memory_space<smem>>
    %63 = vector.broadcast %62 : f32 to vector<1x256xf32>
    %64 = arith.mulf %63, %24 : vector<1x256xf32>
    %65 = arith.addf %61, %64 : vector<1x256xf32>
    %c14 = arith.constant 14 : index
    %66 = memref.load %arg1[%c14] : memref<98xf32, #tpu.memory_space<smem>>
    %67 = vector.broadcast %66 : f32 to vector<1x256xf32>
    %68 = arith.mulf %67, %32 : vector<1x256xf32>
    %69 = arith.addf %65, %68 : vector<1x256xf32>
    %c21 = arith.constant 21 : index
    %70 = memref.load %arg1[%c21] : memref<98xf32, #tpu.memory_space<smem>>
    %71 = vector.broadcast %70 : f32 to vector<1x256xf32>
    %72 = arith.mulf %71, %5 : vector<1x256xf32>
    %73 = arith.addf %69, %72 : vector<1x256xf32>
    %c28 = arith.constant 28 : index
    %74 = memref.load %arg1[%c28] : memref<98xf32, #tpu.memory_space<smem>>
    %75 = vector.broadcast %74 : f32 to vector<1x256xf32>
    %76 = arith.mulf %75, %40 : vector<1x256xf32>
    %77 = arith.addf %73, %76 : vector<1x256xf32>
    %c35 = arith.constant 35 : index
    %78 = memref.load %arg1[%c35] : memref<98xf32, #tpu.memory_space<smem>>
    %79 = vector.broadcast %78 : f32 to vector<1x256xf32>
    %80 = arith.mulf %79, %48 : vector<1x256xf32>
    %81 = arith.addf %77, %80 : vector<1x256xf32>
    %c42 = arith.constant 42 : index
    %82 = memref.load %arg1[%c42] : memref<98xf32, #tpu.memory_space<smem>>
    %83 = vector.broadcast %82 : f32 to vector<1x256xf32>
    %84 = arith.mulf %83, %56 : vector<1x256xf32>
    %85 = arith.addf %81, %84 : vector<1x256xf32>
    %c3_i32 = arith.constant 3 : i32
    %86 = tpu.dynamic_rotate %85 by %c3_i32 dim 1 : vector<1x256xf32>, i32 -> vector<1x256xf32>
    %c-3_i32 = arith.constant -3 : i32
    %87 = vector.broadcast %c-3_i32 : i32 to vector<1x256xi32>
    %88 = arith.addi %7, %87 : vector<1x256xi32>
    %c0_i32_24 = arith.constant 0 : i32
    %89 = vector.broadcast %c0_i32_24 : i32 to vector<1x256xi32>
    %90 = arith.cmpi sge, %88, %89 : vector<1x256xi32>
    %c-3_i32_25 = arith.constant -3 : i32
    %91 = vector.broadcast %c-3_i32_25 : i32 to vector<1x256xi32>
    %92 = arith.addi %7, %91 : vector<1x256xi32>
    %c16_i32_26 = arith.constant 16 : i32
    %93 = vector.broadcast %c16_i32_26 : i32 to vector<1x256xi32>
    %94 = arith.cmpi slt, %92, %93 : vector<1x256xi32>
    %95 = arith.andi %90, %94 : vector<1x256xi1>
    %cst_27 = arith.constant 0.000000e+00 : f32
    %96 = vector.broadcast %cst_27 : f32 to vector<1x256xf32>
    %97 = arith.select %95, %86, %96 : vector<1x256xi1>, vector<1x256xf32>
    %98 = arith.addf %8, %97 : vector<1x256xf32>
    %cst_28 = arith.constant 0.000000e+00 : f32
    %99 = vector.broadcast %cst_28 : f32 to vector<1x256xf32>
    %c1 = arith.constant 1 : index
    %100 = memref.load %arg1[%c1] : memref<98xf32, #tpu.memory_space<smem>>
    %101 = vector.broadcast %100 : f32 to vector<1x256xf32>
    %102 = arith.mulf %101, %16 : vector<1x256xf32>
    %103 = arith.addf %99, %102 : vector<1x256xf32>
    %c8 = arith.constant 8 : index
    %104 = memref.load %arg1[%c8] : memref<98xf32, #tpu.memory_space<smem>>
    %105 = vector.broadcast %104 : f32 to vector<1x256xf32>
    %106 = arith.mulf %105, %24 : vector<1x256xf32>
    %107 = arith.addf %103, %106 : vector<1x256xf32>
    %c15 = arith.constant 15 : index
    %108 = memref.load %arg1[%c15] : memref<98xf32, #tpu.memory_space<smem>>
    %109 = vector.broadcast %108 : f32 to vector<1x256xf32>
    %110 = arith.mulf %109, %32 : vector<1x256xf32>
    %111 = arith.addf %107, %110 : vector<1x256xf32>
    %c22 = arith.constant 22 : index
    %112 = memref.load %arg1[%c22] : memref<98xf32, #tpu.memory_space<smem>>
    %113 = vector.broadcast %112 : f32 to vector<1x256xf32>
    %114 = arith.mulf %113, %5 : vector<1x256xf32>
    %115 = arith.addf %111, %114 : vector<1x256xf32>
    %c29 = arith.constant 29 : index
    %116 = memref.load %arg1[%c29] : memref<98xf32, #tpu.memory_space<smem>>
    %117 = vector.broadcast %116 : f32 to vector<1x256xf32>
    %118 = arith.mulf %117, %40 : vector<1x256xf32>
    %119 = arith.addf %115, %118 : vector<1x256xf32>
    %c36 = arith.constant 36 : index
    %120 = memref.load %arg1[%c36] : memref<98xf32, #tpu.memory_space<smem>>
    %121 = vector.broadcast %120 : f32 to vector<1x256xf32>
    %122 = arith.mulf %121, %48 : vector<1x256xf32>
    %123 = arith.addf %119, %122 : vector<1x256xf32>
    %c43 = arith.constant 43 : index
    %124 = memref.load %arg1[%c43] : memref<98xf32, #tpu.memory_space<smem>>
    %125 = vector.broadcast %124 : f32 to vector<1x256xf32>
    %126 = arith.mulf %125, %56 : vector<1x256xf32>
    %127 = arith.addf %123, %126 : vector<1x256xf32>
    %c2_i32 = arith.constant 2 : i32
    %128 = tpu.dynamic_rotate %127 by %c2_i32 dim 1 : vector<1x256xf32>, i32 -> vector<1x256xf32>
    %c-2_i32 = arith.constant -2 : i32
    %129 = vector.broadcast %c-2_i32 : i32 to vector<1x256xi32>
    %130 = arith.addi %7, %129 : vector<1x256xi32>
    %c0_i32_29 = arith.constant 0 : i32
    %131 = vector.broadcast %c0_i32_29 : i32 to vector<1x256xi32>
    %132 = arith.cmpi sge, %130, %131 : vector<1x256xi32>
    %c-2_i32_30 = arith.constant -2 : i32
    %133 = vector.broadcast %c-2_i32_30 : i32 to vector<1x256xi32>
    %134 = arith.addi %7, %133 : vector<1x256xi32>
    %c16_i32_31 = arith.constant 16 : i32
    %135 = vector.broadcast %c16_i32_31 : i32 to vector<1x256xi32>
    %136 = arith.cmpi slt, %134, %135 : vector<1x256xi32>
    %137 = arith.andi %132, %136 : vector<1x256xi1>
    %cst_32 = arith.constant 0.000000e+00 : f32
    %138 = vector.broadcast %cst_32 : f32 to vector<1x256xf32>
    %139 = arith.select %137, %128, %138 : vector<1x256xi1>, vector<1x256xf32>
    %140 = arith.addf %98, %139 : vector<1x256xf32>
    %cst_33 = arith.constant 0.000000e+00 : f32
    %141 = vector.broadcast %cst_33 : f32 to vector<1x256xf32>
    %c2 = arith.constant 2 : index
    %142 = memref.load %arg1[%c2] : memref<98xf32, #tpu.memory_space<smem>>
    %143 = vector.broadcast %142 : f32 to vector<1x256xf32>
    %144 = arith.mulf %143, %16 : vector<1x256xf32>
    %145 = arith.addf %141, %144 : vector<1x256xf32>
    %c9 = arith.constant 9 : index
    %146 = memref.load %arg1[%c9] : memref<98xf32, #tpu.memory_space<smem>>
    %147 = vector.broadcast %146 : f32 to vector<1x256xf32>
    %148 = arith.mulf %147, %24 : vector<1x256xf32>
    %149 = arith.addf %145, %148 : vector<1x256xf32>
    %c16 = arith.constant 16 : index
    %150 = memref.load %arg1[%c16] : memref<98xf32, #tpu.memory_space<smem>>
    %151 = vector.broadcast %150 : f32 to vector<1x256xf32>
    %152 = arith.mulf %151, %32 : vector<1x256xf32>
    %153 = arith.addf %149, %152 : vector<1x256xf32>
    %c23 = arith.constant 23 : index
    %154 = memref.load %arg1[%c23] : memref<98xf32, #tpu.memory_space<smem>>
    %155 = vector.broadcast %154 : f32 to vector<1x256xf32>
    %156 = arith.mulf %155, %5 : vector<1x256xf32>
    %157 = arith.addf %153, %156 : vector<1x256xf32>
    %c30 = arith.constant 30 : index
    %158 = memref.load %arg1[%c30] : memref<98xf32, #tpu.memory_space<smem>>
    %159 = vector.broadcast %158 : f32 to vector<1x256xf32>
    %160 = arith.mulf %159, %40 : vector<1x256xf32>
    %161 = arith.addf %157, %160 : vector<1x256xf32>
    %c37 = arith.constant 37 : index
    %162 = memref.load %arg1[%c37] : memref<98xf32, #tpu.memory_space<smem>>
    %163 = vector.broadcast %162 : f32 to vector<1x256xf32>
    %164 = arith.mulf %163, %48 : vector<1x256xf32>
    %165 = arith.addf %161, %164 : vector<1x256xf32>
    %c44 = arith.constant 44 : index
    %166 = memref.load %arg1[%c44] : memref<98xf32, #tpu.memory_space<smem>>
    %167 = vector.broadcast %166 : f32 to vector<1x256xf32>
    %168 = arith.mulf %167, %56 : vector<1x256xf32>
    %169 = arith.addf %165, %168 : vector<1x256xf32>
    %c1_i32_34 = arith.constant 1 : i32
    %170 = tpu.dynamic_rotate %169 by %c1_i32_34 dim 1 : vector<1x256xf32>, i32 -> vector<1x256xf32>
    %c-1_i32 = arith.constant -1 : i32
    %171 = vector.broadcast %c-1_i32 : i32 to vector<1x256xi32>
    %172 = arith.addi %7, %171 : vector<1x256xi32>
    %c0_i32_35 = arith.constant 0 : i32
    %173 = vector.broadcast %c0_i32_35 : i32 to vector<1x256xi32>
    %174 = arith.cmpi sge, %172, %173 : vector<1x256xi32>
    %c-1_i32_36 = arith.constant -1 : i32
    %175 = vector.broadcast %c-1_i32_36 : i32 to vector<1x256xi32>
    %176 = arith.addi %7, %175 : vector<1x256xi32>
    %c16_i32_37 = arith.constant 16 : i32
    %177 = vector.broadcast %c16_i32_37 : i32 to vector<1x256xi32>
    %178 = arith.cmpi slt, %176, %177 : vector<1x256xi32>
    %179 = arith.andi %174, %178 : vector<1x256xi1>
    %cst_38 = arith.constant 0.000000e+00 : f32
    %180 = vector.broadcast %cst_38 : f32 to vector<1x256xf32>
    %181 = arith.select %179, %170, %180 : vector<1x256xi1>, vector<1x256xf32>
    %182 = arith.addf %140, %181 : vector<1x256xf32>
    %cst_39 = arith.constant 0.000000e+00 : f32
    %183 = vector.broadcast %cst_39 : f32 to vector<1x256xf32>
    %c3 = arith.constant 3 : index
    %184 = memref.load %arg1[%c3] : memref<98xf32, #tpu.memory_space<smem>>
    %185 = vector.broadcast %184 : f32 to vector<1x256xf32>
    %186 = arith.mulf %185, %16 : vector<1x256xf32>
    %187 = arith.addf %183, %186 : vector<1x256xf32>
    %c10 = arith.constant 10 : index
    %188 = memref.load %arg1[%c10] : memref<98xf32, #tpu.memory_space<smem>>
    %189 = vector.broadcast %188 : f32 to vector<1x256xf32>
    %190 = arith.mulf %189, %24 : vector<1x256xf32>
    %191 = arith.addf %187, %190 : vector<1x256xf32>
    %c17 = arith.constant 17 : index
    %192 = memref.load %arg1[%c17] : memref<98xf32, #tpu.memory_space<smem>>
    %193 = vector.broadcast %192 : f32 to vector<1x256xf32>
    %194 = arith.mulf %193, %32 : vector<1x256xf32>
    %195 = arith.addf %191, %194 : vector<1x256xf32>
    %c24 = arith.constant 24 : index
    %196 = memref.load %arg1[%c24] : memref<98xf32, #tpu.memory_space<smem>>
    %197 = vector.broadcast %196 : f32 to vector<1x256xf32>
    %198 = arith.mulf %197, %5 : vector<1x256xf32>
    %199 = arith.addf %195, %198 : vector<1x256xf32>
    %c31 = arith.constant 31 : index
    %200 = memref.load %arg1[%c31] : memref<98xf32, #tpu.memory_space<smem>>
    %201 = vector.broadcast %200 : f32 to vector<1x256xf32>
    %202 = arith.mulf %201, %40 : vector<1x256xf32>
    %203 = arith.addf %199, %202 : vector<1x256xf32>
    %c38 = arith.constant 38 : index
    %204 = memref.load %arg1[%c38] : memref<98xf32, #tpu.memory_space<smem>>
    %205 = vector.broadcast %204 : f32 to vector<1x256xf32>
    %206 = arith.mulf %205, %48 : vector<1x256xf32>
    %207 = arith.addf %203, %206 : vector<1x256xf32>
    %c45 = arith.constant 45 : index
    %208 = memref.load %arg1[%c45] : memref<98xf32, #tpu.memory_space<smem>>
    %209 = vector.broadcast %208 : f32 to vector<1x256xf32>
    %210 = arith.mulf %209, %56 : vector<1x256xf32>
    %211 = arith.addf %207, %210 : vector<1x256xf32>
    %212 = arith.addf %182, %211 : vector<1x256xf32>
    %cst_40 = arith.constant 0.000000e+00 : f32
    %213 = vector.broadcast %cst_40 : f32 to vector<1x256xf32>
    %c4 = arith.constant 4 : index
    %214 = memref.load %arg1[%c4] : memref<98xf32, #tpu.memory_space<smem>>
    %215 = vector.broadcast %214 : f32 to vector<1x256xf32>
    %216 = arith.mulf %215, %16 : vector<1x256xf32>
    %217 = arith.addf %213, %216 : vector<1x256xf32>
    %c11 = arith.constant 11 : index
    %218 = memref.load %arg1[%c11] : memref<98xf32, #tpu.memory_space<smem>>
    %219 = vector.broadcast %218 : f32 to vector<1x256xf32>
    %220 = arith.mulf %219, %24 : vector<1x256xf32>
    %221 = arith.addf %217, %220 : vector<1x256xf32>
    %c18 = arith.constant 18 : index
    %222 = memref.load %arg1[%c18] : memref<98xf32, #tpu.memory_space<smem>>
    %223 = vector.broadcast %222 : f32 to vector<1x256xf32>
    %224 = arith.mulf %223, %32 : vector<1x256xf32>
    %225 = arith.addf %221, %224 : vector<1x256xf32>
    %c25 = arith.constant 25 : index
    %226 = memref.load %arg1[%c25] : memref<98xf32, #tpu.memory_space<smem>>
    %227 = vector.broadcast %226 : f32 to vector<1x256xf32>
    %228 = arith.mulf %227, %5 : vector<1x256xf32>
    %229 = arith.addf %225, %228 : vector<1x256xf32>
    %c32 = arith.constant 32 : index
    %230 = memref.load %arg1[%c32] : memref<98xf32, #tpu.memory_space<smem>>
    %231 = vector.broadcast %230 : f32 to vector<1x256xf32>
    %232 = arith.mulf %231, %40 : vector<1x256xf32>
    %233 = arith.addf %229, %232 : vector<1x256xf32>
    %c39 = arith.constant 39 : index
    %234 = memref.load %arg1[%c39] : memref<98xf32, #tpu.memory_space<smem>>
    %235 = vector.broadcast %234 : f32 to vector<1x256xf32>
    %236 = arith.mulf %235, %48 : vector<1x256xf32>
    %237 = arith.addf %233, %236 : vector<1x256xf32>
    %c46 = arith.constant 46 : index
    %238 = memref.load %arg1[%c46] : memref<98xf32, #tpu.memory_space<smem>>
    %239 = vector.broadcast %238 : f32 to vector<1x256xf32>
    %240 = arith.mulf %239, %56 : vector<1x256xf32>
    %241 = arith.addf %237, %240 : vector<1x256xf32>
    %c255_i32 = arith.constant 255 : i32
    %242 = tpu.dynamic_rotate %241 by %c255_i32 dim 1 : vector<1x256xf32>, i32 -> vector<1x256xf32>
    %c1_i32_41 = arith.constant 1 : i32
    %243 = vector.broadcast %c1_i32_41 : i32 to vector<1x256xi32>
    %244 = arith.addi %7, %243 : vector<1x256xi32>
    %c0_i32_42 = arith.constant 0 : i32
    %245 = vector.broadcast %c0_i32_42 : i32 to vector<1x256xi32>
    %246 = arith.cmpi sge, %244, %245 : vector<1x256xi32>
    %c1_i32_43 = arith.constant 1 : i32
    %247 = vector.broadcast %c1_i32_43 : i32 to vector<1x256xi32>
    %248 = arith.addi %7, %247 : vector<1x256xi32>
    %c16_i32_44 = arith.constant 16 : i32
    %249 = vector.broadcast %c16_i32_44 : i32 to vector<1x256xi32>
    %250 = arith.cmpi slt, %248, %249 : vector<1x256xi32>
    %251 = arith.andi %246, %250 : vector<1x256xi1>
    %cst_45 = arith.constant 0.000000e+00 : f32
    %252 = vector.broadcast %cst_45 : f32 to vector<1x256xf32>
    %253 = arith.select %251, %242, %252 : vector<1x256xi1>, vector<1x256xf32>
    %254 = arith.addf %212, %253 : vector<1x256xf32>
    %cst_46 = arith.constant 0.000000e+00 : f32
    %255 = vector.broadcast %cst_46 : f32 to vector<1x256xf32>
    %c5 = arith.constant 5 : index
    %256 = memref.load %arg1[%c5] : memref<98xf32, #tpu.memory_space<smem>>
    %257 = vector.broadcast %256 : f32 to vector<1x256xf32>
    %258 = arith.mulf %257, %16 : vector<1x256xf32>
    %259 = arith.addf %255, %258 : vector<1x256xf32>
    %c12 = arith.constant 12 : index
    %260 = memref.load %arg1[%c12] : memref<98xf32, #tpu.memory_space<smem>>
    %261 = vector.broadcast %260 : f32 to vector<1x256xf32>
    %262 = arith.mulf %261, %24 : vector<1x256xf32>
    %263 = arith.addf %259, %262 : vector<1x256xf32>
    %c19 = arith.constant 19 : index
    %264 = memref.load %arg1[%c19] : memref<98xf32, #tpu.memory_space<smem>>
    %265 = vector.broadcast %264 : f32 to vector<1x256xf32>
    %266 = arith.mulf %265, %32 : vector<1x256xf32>
    %267 = arith.addf %263, %266 : vector<1x256xf32>
    %c26 = arith.constant 26 : index
    %268 = memref.load %arg1[%c26] : memref<98xf32, #tpu.memory_space<smem>>
    %269 = vector.broadcast %268 : f32 to vector<1x256xf32>
    %270 = arith.mulf %269, %5 : vector<1x256xf32>
    %271 = arith.addf %267, %270 : vector<1x256xf32>
    %c33 = arith.constant 33 : index
    %272 = memref.load %arg1[%c33] : memref<98xf32, #tpu.memory_space<smem>>
    %273 = vector.broadcast %272 : f32 to vector<1x256xf32>
    %274 = arith.mulf %273, %40 : vector<1x256xf32>
    %275 = arith.addf %271, %274 : vector<1x256xf32>
    %c40 = arith.constant 40 : index
    %276 = memref.load %arg1[%c40] : memref<98xf32, #tpu.memory_space<smem>>
    %277 = vector.broadcast %276 : f32 to vector<1x256xf32>
    %278 = arith.mulf %277, %48 : vector<1x256xf32>
    %279 = arith.addf %275, %278 : vector<1x256xf32>
    %c47 = arith.constant 47 : index
    %280 = memref.load %arg1[%c47] : memref<98xf32, #tpu.memory_space<smem>>
    %281 = vector.broadcast %280 : f32 to vector<1x256xf32>
    %282 = arith.mulf %281, %56 : vector<1x256xf32>
    %283 = arith.addf %279, %282 : vector<1x256xf32>
    %c254_i32 = arith.constant 254 : i32
    %284 = tpu.dynamic_rotate %283 by %c254_i32 dim 1 : vector<1x256xf32>, i32 -> vector<1x256xf32>
    %c2_i32_47 = arith.constant 2 : i32
    %285 = vector.broadcast %c2_i32_47 : i32 to vector<1x256xi32>
    %286 = arith.addi %7, %285 : vector<1x256xi32>
    %c0_i32_48 = arith.constant 0 : i32
    %287 = vector.broadcast %c0_i32_48 : i32 to vector<1x256xi32>
    %288 = arith.cmpi sge, %286, %287 : vector<1x256xi32>
    %c2_i32_49 = arith.constant 2 : i32
    %289 = vector.broadcast %c2_i32_49 : i32 to vector<1x256xi32>
    %290 = arith.addi %7, %289 : vector<1x256xi32>
    %c16_i32_50 = arith.constant 16 : i32
    %291 = vector.broadcast %c16_i32_50 : i32 to vector<1x256xi32>
    %292 = arith.cmpi slt, %290, %291 : vector<1x256xi32>
    %293 = arith.andi %288, %292 : vector<1x256xi1>
    %cst_51 = arith.constant 0.000000e+00 : f32
    %294 = vector.broadcast %cst_51 : f32 to vector<1x256xf32>
    %295 = arith.select %293, %284, %294 : vector<1x256xi1>, vector<1x256xf32>
    %296 = arith.addf %254, %295 : vector<1x256xf32>
    %cst_52 = arith.constant 0.000000e+00 : f32
    %297 = vector.broadcast %cst_52 : f32 to vector<1x256xf32>
    %c6 = arith.constant 6 : index
    %298 = memref.load %arg1[%c6] : memref<98xf32, #tpu.memory_space<smem>>
    %299 = vector.broadcast %298 : f32 to vector<1x256xf32>
    %300 = arith.mulf %299, %16 : vector<1x256xf32>
    %301 = arith.addf %297, %300 : vector<1x256xf32>
    %c13 = arith.constant 13 : index
    %302 = memref.load %arg1[%c13] : memref<98xf32, #tpu.memory_space<smem>>
    %303 = vector.broadcast %302 : f32 to vector<1x256xf32>
    %304 = arith.mulf %303, %24 : vector<1x256xf32>
    %305 = arith.addf %301, %304 : vector<1x256xf32>
    %c20 = arith.constant 20 : index
    %306 = memref.load %arg1[%c20] : memref<98xf32, #tpu.memory_space<smem>>
    %307 = vector.broadcast %306 : f32 to vector<1x256xf32>
    %308 = arith.mulf %307, %32 : vector<1x256xf32>
    %309 = arith.addf %305, %308 : vector<1x256xf32>
    %c27 = arith.constant 27 : index
    %310 = memref.load %arg1[%c27] : memref<98xf32, #tpu.memory_space<smem>>
    %311 = vector.broadcast %310 : f32 to vector<1x256xf32>
    %312 = arith.mulf %311, %5 : vector<1x256xf32>
    %313 = arith.addf %309, %312 : vector<1x256xf32>
    %c34 = arith.constant 34 : index
    %314 = memref.load %arg1[%c34] : memref<98xf32, #tpu.memory_space<smem>>
    %315 = vector.broadcast %314 : f32 to vector<1x256xf32>
    %316 = arith.mulf %315, %40 : vector<1x256xf32>
    %317 = arith.addf %313, %316 : vector<1x256xf32>
    %c41 = arith.constant 41 : index
    %318 = memref.load %arg1[%c41] : memref<98xf32, #tpu.memory_space<smem>>
    %319 = vector.broadcast %318 : f32 to vector<1x256xf32>
    %320 = arith.mulf %319, %48 : vector<1x256xf32>
    %321 = arith.addf %317, %320 : vector<1x256xf32>
    %c48 = arith.constant 48 : index
    %322 = memref.load %arg1[%c48] : memref<98xf32, #tpu.memory_space<smem>>
    %323 = vector.broadcast %322 : f32 to vector<1x256xf32>
    %324 = arith.mulf %323, %56 : vector<1x256xf32>
    %325 = arith.addf %321, %324 : vector<1x256xf32>
    %c253_i32 = arith.constant 253 : i32
    %326 = tpu.dynamic_rotate %325 by %c253_i32 dim 1 : vector<1x256xf32>, i32 -> vector<1x256xf32>
    %c3_i32_53 = arith.constant 3 : i32
    %327 = vector.broadcast %c3_i32_53 : i32 to vector<1x256xi32>
    %328 = arith.addi %7, %327 : vector<1x256xi32>
    %c0_i32_54 = arith.constant 0 : i32
    %329 = vector.broadcast %c0_i32_54 : i32 to vector<1x256xi32>
    %330 = arith.cmpi sge, %328, %329 : vector<1x256xi32>
    %c3_i32_55 = arith.constant 3 : i32
    %331 = vector.broadcast %c3_i32_55 : i32 to vector<1x256xi32>
    %332 = arith.addi %7, %331 : vector<1x256xi32>
    %c16_i32_56 = arith.constant 16 : i32
    %333 = vector.broadcast %c16_i32_56 : i32 to vector<1x256xi32>
    %334 = arith.cmpi slt, %332, %333 : vector<1x256xi32>
    %335 = arith.andi %330, %334 : vector<1x256xi1>
    %cst_57 = arith.constant 0.000000e+00 : f32
    %336 = vector.broadcast %cst_57 : f32 to vector<1x256xf32>
    %337 = arith.select %335, %326, %336 : vector<1x256xi1>, vector<1x256xf32>
    %338 = arith.addf %296, %337 : vector<1x256xf32>
    %c48_i32_58 = arith.constant 48 : i32
    %339 = tpu.dynamic_rotate %3#1 by %c48_i32_58 dim 1 : vector<1x256xf32>, i32 -> vector<1x256xf32>
    %c48_i32_59 = arith.constant 48 : i32
    %340 = vector.broadcast %c48_i32_59 : i32 to vector<1x256xi32>
    %341 = arith.cmpi sge, %6, %340 : vector<1x256xi32>
    %c256_i32_60 = arith.constant 256 : i32
    %342 = vector.broadcast %c256_i32_60 : i32 to vector<1x256xi32>
    %343 = arith.cmpi slt, %6, %342 : vector<1x256xi32>
    %344 = arith.andi %341, %343 : vector<1x256xi1>
    %cst_61 = arith.constant 0.000000e+00 : f32
    %345 = vector.broadcast %cst_61 : f32 to vector<1x256xf32>
    %346 = arith.select %344, %339, %345 : vector<1x256xi1>, vector<1x256xf32>
    %c32_i32_62 = arith.constant 32 : i32
    %347 = tpu.dynamic_rotate %3#1 by %c32_i32_62 dim 1 : vector<1x256xf32>, i32 -> vector<1x256xf32>
    %c32_i32_63 = arith.constant 32 : i32
    %348 = vector.broadcast %c32_i32_63 : i32 to vector<1x256xi32>
    %349 = arith.cmpi sge, %6, %348 : vector<1x256xi32>
    %c256_i32_64 = arith.constant 256 : i32
    %350 = vector.broadcast %c256_i32_64 : i32 to vector<1x256xi32>
    %351 = arith.cmpi slt, %6, %350 : vector<1x256xi32>
    %352 = arith.andi %349, %351 : vector<1x256xi1>
    %cst_65 = arith.constant 0.000000e+00 : f32
    %353 = vector.broadcast %cst_65 : f32 to vector<1x256xf32>
    %354 = arith.select %352, %347, %353 : vector<1x256xi1>, vector<1x256xf32>
    %c16_i32_66 = arith.constant 16 : i32
    %355 = tpu.dynamic_rotate %3#1 by %c16_i32_66 dim 1 : vector<1x256xf32>, i32 -> vector<1x256xf32>
    %c16_i32_67 = arith.constant 16 : i32
    %356 = vector.broadcast %c16_i32_67 : i32 to vector<1x256xi32>
    %357 = arith.cmpi sge, %6, %356 : vector<1x256xi32>
    %c256_i32_68 = arith.constant 256 : i32
    %358 = vector.broadcast %c256_i32_68 : i32 to vector<1x256xi32>
    %359 = arith.cmpi slt, %6, %358 : vector<1x256xi32>
    %360 = arith.andi %357, %359 : vector<1x256xi1>
    %cst_69 = arith.constant 0.000000e+00 : f32
    %361 = vector.broadcast %cst_69 : f32 to vector<1x256xf32>
    %362 = arith.select %360, %355, %361 : vector<1x256xi1>, vector<1x256xf32>
    %c240_i32_70 = arith.constant 240 : i32
    %363 = tpu.dynamic_rotate %3#1 by %c240_i32_70 dim 1 : vector<1x256xf32>, i32 -> vector<1x256xf32>
    %c0_i32_71 = arith.constant 0 : i32
    %364 = vector.broadcast %c0_i32_71 : i32 to vector<1x256xi32>
    %365 = arith.cmpi sge, %6, %364 : vector<1x256xi32>
    %c240_i32_72 = arith.constant 240 : i32
    %366 = vector.broadcast %c240_i32_72 : i32 to vector<1x256xi32>
    %367 = arith.cmpi slt, %6, %366 : vector<1x256xi32>
    %368 = arith.andi %365, %367 : vector<1x256xi1>
    %cst_73 = arith.constant 0.000000e+00 : f32
    %369 = vector.broadcast %cst_73 : f32 to vector<1x256xf32>
    %370 = arith.select %368, %363, %369 : vector<1x256xi1>, vector<1x256xf32>
    %c224_i32_74 = arith.constant 224 : i32
    %371 = tpu.dynamic_rotate %3#1 by %c224_i32_74 dim 1 : vector<1x256xf32>, i32 -> vector<1x256xf32>
    %c0_i32_75 = arith.constant 0 : i32
    %372 = vector.broadcast %c0_i32_75 : i32 to vector<1x256xi32>
    %373 = arith.cmpi sge, %6, %372 : vector<1x256xi32>
    %c224_i32_76 = arith.constant 224 : i32
    %374 = vector.broadcast %c224_i32_76 : i32 to vector<1x256xi32>
    %375 = arith.cmpi slt, %6, %374 : vector<1x256xi32>
    %376 = arith.andi %373, %375 : vector<1x256xi1>
    %cst_77 = arith.constant 0.000000e+00 : f32
    %377 = vector.broadcast %cst_77 : f32 to vector<1x256xf32>
    %378 = arith.select %376, %371, %377 : vector<1x256xi1>, vector<1x256xf32>
    %c208_i32_78 = arith.constant 208 : i32
    %379 = tpu.dynamic_rotate %3#1 by %c208_i32_78 dim 1 : vector<1x256xf32>, i32 -> vector<1x256xf32>
    %c0_i32_79 = arith.constant 0 : i32
    %380 = vector.broadcast %c0_i32_79 : i32 to vector<1x256xi32>
    %381 = arith.cmpi sge, %6, %380 : vector<1x256xi32>
    %c208_i32_80 = arith.constant 208 : i32
    %382 = vector.broadcast %c208_i32_80 : i32 to vector<1x256xi32>
    %383 = arith.cmpi slt, %6, %382 : vector<1x256xi32>
    %384 = arith.andi %381, %383 : vector<1x256xi1>
    %cst_81 = arith.constant 0.000000e+00 : f32
    %385 = vector.broadcast %cst_81 : f32 to vector<1x256xf32>
    %386 = arith.select %384, %379, %385 : vector<1x256xi1>, vector<1x256xf32>
    %cst_82 = arith.constant 0.000000e+00 : f32
    %387 = vector.broadcast %cst_82 : f32 to vector<1x256xf32>
    %c49 = arith.constant 49 : index
    %388 = memref.load %arg1[%c49] : memref<98xf32, #tpu.memory_space<smem>>
    %389 = vector.broadcast %388 : f32 to vector<1x256xf32>
    %390 = arith.mulf %389, %346 : vector<1x256xf32>
    %391 = arith.addf %387, %390 : vector<1x256xf32>
    %c56 = arith.constant 56 : index
    %392 = memref.load %arg1[%c56] : memref<98xf32, #tpu.memory_space<smem>>
    %393 = vector.broadcast %392 : f32 to vector<1x256xf32>
    %394 = arith.mulf %393, %354 : vector<1x256xf32>
    %395 = arith.addf %391, %394 : vector<1x256xf32>
    %c63 = arith.constant 63 : index
    %396 = memref.load %arg1[%c63] : memref<98xf32, #tpu.memory_space<smem>>
    %397 = vector.broadcast %396 : f32 to vector<1x256xf32>
    %398 = arith.mulf %397, %362 : vector<1x256xf32>
    %399 = arith.addf %395, %398 : vector<1x256xf32>
    %c70 = arith.constant 70 : index
    %400 = memref.load %arg1[%c70] : memref<98xf32, #tpu.memory_space<smem>>
    %401 = vector.broadcast %400 : f32 to vector<1x256xf32>
    %402 = arith.mulf %401, %3#1 : vector<1x256xf32>
    %403 = arith.addf %399, %402 : vector<1x256xf32>
    %c77 = arith.constant 77 : index
    %404 = memref.load %arg1[%c77] : memref<98xf32, #tpu.memory_space<smem>>
    %405 = vector.broadcast %404 : f32 to vector<1x256xf32>
    %406 = arith.mulf %405, %370 : vector<1x256xf32>
    %407 = arith.addf %403, %406 : vector<1x256xf32>
    %c84 = arith.constant 84 : index
    %408 = memref.load %arg1[%c84] : memref<98xf32, #tpu.memory_space<smem>>
    %409 = vector.broadcast %408 : f32 to vector<1x256xf32>
    %410 = arith.mulf %409, %378 : vector<1x256xf32>
    %411 = arith.addf %407, %410 : vector<1x256xf32>
    %c91 = arith.constant 91 : index
    %412 = memref.load %arg1[%c91] : memref<98xf32, #tpu.memory_space<smem>>
    %413 = vector.broadcast %412 : f32 to vector<1x256xf32>
    %414 = arith.mulf %413, %386 : vector<1x256xf32>
    %415 = arith.addf %411, %414 : vector<1x256xf32>
    %c3_i32_83 = arith.constant 3 : i32
    %416 = tpu.dynamic_rotate %415 by %c3_i32_83 dim 1 : vector<1x256xf32>, i32 -> vector<1x256xf32>
    %c-3_i32_84 = arith.constant -3 : i32
    %417 = vector.broadcast %c-3_i32_84 : i32 to vector<1x256xi32>
    %418 = arith.addi %7, %417 : vector<1x256xi32>
    %c0_i32_85 = arith.constant 0 : i32
    %419 = vector.broadcast %c0_i32_85 : i32 to vector<1x256xi32>
    %420 = arith.cmpi sge, %418, %419 : vector<1x256xi32>
    %c-3_i32_86 = arith.constant -3 : i32
    %421 = vector.broadcast %c-3_i32_86 : i32 to vector<1x256xi32>
    %422 = arith.addi %7, %421 : vector<1x256xi32>
    %c16_i32_87 = arith.constant 16 : i32
    %423 = vector.broadcast %c16_i32_87 : i32 to vector<1x256xi32>
    %424 = arith.cmpi slt, %422, %423 : vector<1x256xi32>
    %425 = arith.andi %420, %424 : vector<1x256xi1>
    %cst_88 = arith.constant 0.000000e+00 : f32
    %426 = vector.broadcast %cst_88 : f32 to vector<1x256xf32>
    %427 = arith.select %425, %416, %426 : vector<1x256xi1>, vector<1x256xf32>
    %428 = arith.addf %338, %427 : vector<1x256xf32>
    %cst_89 = arith.constant 0.000000e+00 : f32
    %429 = vector.broadcast %cst_89 : f32 to vector<1x256xf32>
    %c50 = arith.constant 50 : index
    %430 = memref.load %arg1[%c50] : memref<98xf32, #tpu.memory_space<smem>>
    %431 = vector.broadcast %430 : f32 to vector<1x256xf32>
    %432 = arith.mulf %431, %346 : vector<1x256xf32>
    %433 = arith.addf %429, %432 : vector<1x256xf32>
    %c57 = arith.constant 57 : index
    %434 = memref.load %arg1[%c57] : memref<98xf32, #tpu.memory_space<smem>>
    %435 = vector.broadcast %434 : f32 to vector<1x256xf32>
    %436 = arith.mulf %435, %354 : vector<1x256xf32>
    %437 = arith.addf %433, %436 : vector<1x256xf32>
    %c64 = arith.constant 64 : index
    %438 = memref.load %arg1[%c64] : memref<98xf32, #tpu.memory_space<smem>>
    %439 = vector.broadcast %438 : f32 to vector<1x256xf32>
    %440 = arith.mulf %439, %362 : vector<1x256xf32>
    %441 = arith.addf %437, %440 : vector<1x256xf32>
    %c71 = arith.constant 71 : index
    %442 = memref.load %arg1[%c71] : memref<98xf32, #tpu.memory_space<smem>>
    %443 = vector.broadcast %442 : f32 to vector<1x256xf32>
    %444 = arith.mulf %443, %3#1 : vector<1x256xf32>
    %445 = arith.addf %441, %444 : vector<1x256xf32>
    %c78 = arith.constant 78 : index
    %446 = memref.load %arg1[%c78] : memref<98xf32, #tpu.memory_space<smem>>
    %447 = vector.broadcast %446 : f32 to vector<1x256xf32>
    %448 = arith.mulf %447, %370 : vector<1x256xf32>
    %449 = arith.addf %445, %448 : vector<1x256xf32>
    %c85 = arith.constant 85 : index
    %450 = memref.load %arg1[%c85] : memref<98xf32, #tpu.memory_space<smem>>
    %451 = vector.broadcast %450 : f32 to vector<1x256xf32>
    %452 = arith.mulf %451, %378 : vector<1x256xf32>
    %453 = arith.addf %449, %452 : vector<1x256xf32>
    %c92 = arith.constant 92 : index
    %454 = memref.load %arg1[%c92] : memref<98xf32, #tpu.memory_space<smem>>
    %455 = vector.broadcast %454 : f32 to vector<1x256xf32>
    %456 = arith.mulf %455, %386 : vector<1x256xf32>
    %457 = arith.addf %453, %456 : vector<1x256xf32>
    %c2_i32_90 = arith.constant 2 : i32
    %458 = tpu.dynamic_rotate %457 by %c2_i32_90 dim 1 : vector<1x256xf32>, i32 -> vector<1x256xf32>
    %c-2_i32_91 = arith.constant -2 : i32
    %459 = vector.broadcast %c-2_i32_91 : i32 to vector<1x256xi32>
    %460 = arith.addi %7, %459 : vector<1x256xi32>
    %c0_i32_92 = arith.constant 0 : i32
    %461 = vector.broadcast %c0_i32_92 : i32 to vector<1x256xi32>
    %462 = arith.cmpi sge, %460, %461 : vector<1x256xi32>
    %c-2_i32_93 = arith.constant -2 : i32
    %463 = vector.broadcast %c-2_i32_93 : i32 to vector<1x256xi32>
    %464 = arith.addi %7, %463 : vector<1x256xi32>
    %c16_i32_94 = arith.constant 16 : i32
    %465 = vector.broadcast %c16_i32_94 : i32 to vector<1x256xi32>
    %466 = arith.cmpi slt, %464, %465 : vector<1x256xi32>
    %467 = arith.andi %462, %466 : vector<1x256xi1>
    %cst_95 = arith.constant 0.000000e+00 : f32
    %468 = vector.broadcast %cst_95 : f32 to vector<1x256xf32>
    %469 = arith.select %467, %458, %468 : vector<1x256xi1>, vector<1x256xf32>
    %470 = arith.addf %428, %469 : vector<1x256xf32>
    %cst_96 = arith.constant 0.000000e+00 : f32
    %471 = vector.broadcast %cst_96 : f32 to vector<1x256xf32>
    %c51 = arith.constant 51 : index
    %472 = memref.load %arg1[%c51] : memref<98xf32, #tpu.memory_space<smem>>
    %473 = vector.broadcast %472 : f32 to vector<1x256xf32>
    %474 = arith.mulf %473, %346 : vector<1x256xf32>
    %475 = arith.addf %471, %474 : vector<1x256xf32>
    %c58 = arith.constant 58 : index
    %476 = memref.load %arg1[%c58] : memref<98xf32, #tpu.memory_space<smem>>
    %477 = vector.broadcast %476 : f32 to vector<1x256xf32>
    %478 = arith.mulf %477, %354 : vector<1x256xf32>
    %479 = arith.addf %475, %478 : vector<1x256xf32>
    %c65 = arith.constant 65 : index
    %480 = memref.load %arg1[%c65] : memref<98xf32, #tpu.memory_space<smem>>
    %481 = vector.broadcast %480 : f32 to vector<1x256xf32>
    %482 = arith.mulf %481, %362 : vector<1x256xf32>
    %483 = arith.addf %479, %482 : vector<1x256xf32>
    %c72 = arith.constant 72 : index
    %484 = memref.load %arg1[%c72] : memref<98xf32, #tpu.memory_space<smem>>
    %485 = vector.broadcast %484 : f32 to vector<1x256xf32>
    %486 = arith.mulf %485, %3#1 : vector<1x256xf32>
    %487 = arith.addf %483, %486 : vector<1x256xf32>
    %c79 = arith.constant 79 : index
    %488 = memref.load %arg1[%c79] : memref<98xf32, #tpu.memory_space<smem>>
    %489 = vector.broadcast %488 : f32 to vector<1x256xf32>
    %490 = arith.mulf %489, %370 : vector<1x256xf32>
    %491 = arith.addf %487, %490 : vector<1x256xf32>
    %c86 = arith.constant 86 : index
    %492 = memref.load %arg1[%c86] : memref<98xf32, #tpu.memory_space<smem>>
    %493 = vector.broadcast %492 : f32 to vector<1x256xf32>
    %494 = arith.mulf %493, %378 : vector<1x256xf32>
    %495 = arith.addf %491, %494 : vector<1x256xf32>
    %c93 = arith.constant 93 : index
    %496 = memref.load %arg1[%c93] : memref<98xf32, #tpu.memory_space<smem>>
    %497 = vector.broadcast %496 : f32 to vector<1x256xf32>
    %498 = arith.mulf %497, %386 : vector<1x256xf32>
    %499 = arith.addf %495, %498 : vector<1x256xf32>
    %c1_i32_97 = arith.constant 1 : i32
    %500 = tpu.dynamic_rotate %499 by %c1_i32_97 dim 1 : vector<1x256xf32>, i32 -> vector<1x256xf32>
    %c-1_i32_98 = arith.constant -1 : i32
    %501 = vector.broadcast %c-1_i32_98 : i32 to vector<1x256xi32>
    %502 = arith.addi %7, %501 : vector<1x256xi32>
    %c0_i32_99 = arith.constant 0 : i32
    %503 = vector.broadcast %c0_i32_99 : i32 to vector<1x256xi32>
    %504 = arith.cmpi sge, %502, %503 : vector<1x256xi32>
    %c-1_i32_100 = arith.constant -1 : i32
    %505 = vector.broadcast %c-1_i32_100 : i32 to vector<1x256xi32>
    %506 = arith.addi %7, %505 : vector<1x256xi32>
    %c16_i32_101 = arith.constant 16 : i32
    %507 = vector.broadcast %c16_i32_101 : i32 to vector<1x256xi32>
    %508 = arith.cmpi slt, %506, %507 : vector<1x256xi32>
    %509 = arith.andi %504, %508 : vector<1x256xi1>
    %cst_102 = arith.constant 0.000000e+00 : f32
    %510 = vector.broadcast %cst_102 : f32 to vector<1x256xf32>
    %511 = arith.select %509, %500, %510 : vector<1x256xi1>, vector<1x256xf32>
    %512 = arith.addf %470, %511 : vector<1x256xf32>
    %cst_103 = arith.constant 0.000000e+00 : f32
    %513 = vector.broadcast %cst_103 : f32 to vector<1x256xf32>
    %c52 = arith.constant 52 : index
    %514 = memref.load %arg1[%c52] : memref<98xf32, #tpu.memory_space<smem>>
    %515 = vector.broadcast %514 : f32 to vector<1x256xf32>
    %516 = arith.mulf %515, %346 : vector<1x256xf32>
    %517 = arith.addf %513, %516 : vector<1x256xf32>
    %c59 = arith.constant 59 : index
    %518 = memref.load %arg1[%c59] : memref<98xf32, #tpu.memory_space<smem>>
    %519 = vector.broadcast %518 : f32 to vector<1x256xf32>
    %520 = arith.mulf %519, %354 : vector<1x256xf32>
    %521 = arith.addf %517, %520 : vector<1x256xf32>
    %c66 = arith.constant 66 : index
    %522 = memref.load %arg1[%c66] : memref<98xf32, #tpu.memory_space<smem>>
    %523 = vector.broadcast %522 : f32 to vector<1x256xf32>
    %524 = arith.mulf %523, %362 : vector<1x256xf32>
    %525 = arith.addf %521, %524 : vector<1x256xf32>
    %c73 = arith.constant 73 : index
    %526 = memref.load %arg1[%c73] : memref<98xf32, #tpu.memory_space<smem>>
    %527 = vector.broadcast %526 : f32 to vector<1x256xf32>
    %528 = arith.mulf %527, %3#1 : vector<1x256xf32>
    %529 = arith.addf %525, %528 : vector<1x256xf32>
    %c80 = arith.constant 80 : index
    %530 = memref.load %arg1[%c80] : memref<98xf32, #tpu.memory_space<smem>>
    %531 = vector.broadcast %530 : f32 to vector<1x256xf32>
    %532 = arith.mulf %531, %370 : vector<1x256xf32>
    %533 = arith.addf %529, %532 : vector<1x256xf32>
    %c87 = arith.constant 87 : index
    %534 = memref.load %arg1[%c87] : memref<98xf32, #tpu.memory_space<smem>>
    %535 = vector.broadcast %534 : f32 to vector<1x256xf32>
    %536 = arith.mulf %535, %378 : vector<1x256xf32>
    %537 = arith.addf %533, %536 : vector<1x256xf32>
    %c94 = arith.constant 94 : index
    %538 = memref.load %arg1[%c94] : memref<98xf32, #tpu.memory_space<smem>>
    %539 = vector.broadcast %538 : f32 to vector<1x256xf32>
    %540 = arith.mulf %539, %386 : vector<1x256xf32>
    %541 = arith.addf %537, %540 : vector<1x256xf32>
    %542 = arith.addf %512, %541 : vector<1x256xf32>
    %cst_104 = arith.constant 0.000000e+00 : f32
    %543 = vector.broadcast %cst_104 : f32 to vector<1x256xf32>
    %c53 = arith.constant 53 : index
    %544 = memref.load %arg1[%c53] : memref<98xf32, #tpu.memory_space<smem>>
    %545 = vector.broadcast %544 : f32 to vector<1x256xf32>
    %546 = arith.mulf %545, %346 : vector<1x256xf32>
    %547 = arith.addf %543, %546 : vector<1x256xf32>
    %c60 = arith.constant 60 : index
    %548 = memref.load %arg1[%c60] : memref<98xf32, #tpu.memory_space<smem>>
    %549 = vector.broadcast %548 : f32 to vector<1x256xf32>
    %550 = arith.mulf %549, %354 : vector<1x256xf32>
    %551 = arith.addf %547, %550 : vector<1x256xf32>
    %c67 = arith.constant 67 : index
    %552 = memref.load %arg1[%c67] : memref<98xf32, #tpu.memory_space<smem>>
    %553 = vector.broadcast %552 : f32 to vector<1x256xf32>
    %554 = arith.mulf %553, %362 : vector<1x256xf32>
    %555 = arith.addf %551, %554 : vector<1x256xf32>
    %c74 = arith.constant 74 : index
    %556 = memref.load %arg1[%c74] : memref<98xf32, #tpu.memory_space<smem>>
    %557 = vector.broadcast %556 : f32 to vector<1x256xf32>
    %558 = arith.mulf %557, %3#1 : vector<1x256xf32>
    %559 = arith.addf %555, %558 : vector<1x256xf32>
    %c81 = arith.constant 81 : index
    %560 = memref.load %arg1[%c81] : memref<98xf32, #tpu.memory_space<smem>>
    %561 = vector.broadcast %560 : f32 to vector<1x256xf32>
    %562 = arith.mulf %561, %370 : vector<1x256xf32>
    %563 = arith.addf %559, %562 : vector<1x256xf32>
    %c88 = arith.constant 88 : index
    %564 = memref.load %arg1[%c88] : memref<98xf32, #tpu.memory_space<smem>>
    %565 = vector.broadcast %564 : f32 to vector<1x256xf32>
    %566 = arith.mulf %565, %378 : vector<1x256xf32>
    %567 = arith.addf %563, %566 : vector<1x256xf32>
    %c95 = arith.constant 95 : index
    %568 = memref.load %arg1[%c95] : memref<98xf32, #tpu.memory_space<smem>>
    %569 = vector.broadcast %568 : f32 to vector<1x256xf32>
    %570 = arith.mulf %569, %386 : vector<1x256xf32>
    %571 = arith.addf %567, %570 : vector<1x256xf32>
    %c255_i32_105 = arith.constant 255 : i32
    %572 = tpu.dynamic_rotate %571 by %c255_i32_105 dim 1 : vector<1x256xf32>, i32 -> vector<1x256xf32>
    %c1_i32_106 = arith.constant 1 : i32
    %573 = vector.broadcast %c1_i32_106 : i32 to vector<1x256xi32>
    %574 = arith.addi %7, %573 : vector<1x256xi32>
    %c0_i32_107 = arith.constant 0 : i32
    %575 = vector.broadcast %c0_i32_107 : i32 to vector<1x256xi32>
    %576 = arith.cmpi sge, %574, %575 : vector<1x256xi32>
    %c1_i32_108 = arith.constant 1 : i32
    %577 = vector.broadcast %c1_i32_108 : i32 to vector<1x256xi32>
    %578 = arith.addi %7, %577 : vector<1x256xi32>
    %c16_i32_109 = arith.constant 16 : i32
    %579 = vector.broadcast %c16_i32_109 : i32 to vector<1x256xi32>
    %580 = arith.cmpi slt, %578, %579 : vector<1x256xi32>
    %581 = arith.andi %576, %580 : vector<1x256xi1>
    %cst_110 = arith.constant 0.000000e+00 : f32
    %582 = vector.broadcast %cst_110 : f32 to vector<1x256xf32>
    %583 = arith.select %581, %572, %582 : vector<1x256xi1>, vector<1x256xf32>
    %584 = arith.addf %542, %583 : vector<1x256xf32>
    %cst_111 = arith.constant 0.000000e+00 : f32
    %585 = vector.broadcast %cst_111 : f32 to vector<1x256xf32>
    %c54 = arith.constant 54 : index
    %586 = memref.load %arg1[%c54] : memref<98xf32, #tpu.memory_space<smem>>
    %587 = vector.broadcast %586 : f32 to vector<1x256xf32>
    %588 = arith.mulf %587, %346 : vector<1x256xf32>
    %589 = arith.addf %585, %588 : vector<1x256xf32>
    %c61 = arith.constant 61 : index
    %590 = memref.load %arg1[%c61] : memref<98xf32, #tpu.memory_space<smem>>
    %591 = vector.broadcast %590 : f32 to vector<1x256xf32>
    %592 = arith.mulf %591, %354 : vector<1x256xf32>
    %593 = arith.addf %589, %592 : vector<1x256xf32>
    %c68 = arith.constant 68 : index
    %594 = memref.load %arg1[%c68] : memref<98xf32, #tpu.memory_space<smem>>
    %595 = vector.broadcast %594 : f32 to vector<1x256xf32>
    %596 = arith.mulf %595, %362 : vector<1x256xf32>
    %597 = arith.addf %593, %596 : vector<1x256xf32>
    %c75 = arith.constant 75 : index
    %598 = memref.load %arg1[%c75] : memref<98xf32, #tpu.memory_space<smem>>
    %599 = vector.broadcast %598 : f32 to vector<1x256xf32>
    %600 = arith.mulf %599, %3#1 : vector<1x256xf32>
    %601 = arith.addf %597, %600 : vector<1x256xf32>
    %c82 = arith.constant 82 : index
    %602 = memref.load %arg1[%c82] : memref<98xf32, #tpu.memory_space<smem>>
    %603 = vector.broadcast %602 : f32 to vector<1x256xf32>
    %604 = arith.mulf %603, %370 : vector<1x256xf32>
    %605 = arith.addf %601, %604 : vector<1x256xf32>
    %c89 = arith.constant 89 : index
    %606 = memref.load %arg1[%c89] : memref<98xf32, #tpu.memory_space<smem>>
    %607 = vector.broadcast %606 : f32 to vector<1x256xf32>
    %608 = arith.mulf %607, %378 : vector<1x256xf32>
    %609 = arith.addf %605, %608 : vector<1x256xf32>
    %c96 = arith.constant 96 : index
    %610 = memref.load %arg1[%c96] : memref<98xf32, #tpu.memory_space<smem>>
    %611 = vector.broadcast %610 : f32 to vector<1x256xf32>
    %612 = arith.mulf %611, %386 : vector<1x256xf32>
    %613 = arith.addf %609, %612 : vector<1x256xf32>
    %c254_i32_112 = arith.constant 254 : i32
    %614 = tpu.dynamic_rotate %613 by %c254_i32_112 dim 1 : vector<1x256xf32>, i32 -> vector<1x256xf32>
    %c2_i32_113 = arith.constant 2 : i32
    %615 = vector.broadcast %c2_i32_113 : i32 to vector<1x256xi32>
    %616 = arith.addi %7, %615 : vector<1x256xi32>
    %c0_i32_114 = arith.constant 0 : i32
    %617 = vector.broadcast %c0_i32_114 : i32 to vector<1x256xi32>
    %618 = arith.cmpi sge, %616, %617 : vector<1x256xi32>
    %c2_i32_115 = arith.constant 2 : i32
    %619 = vector.broadcast %c2_i32_115 : i32 to vector<1x256xi32>
    %620 = arith.addi %7, %619 : vector<1x256xi32>
    %c16_i32_116 = arith.constant 16 : i32
    %621 = vector.broadcast %c16_i32_116 : i32 to vector<1x256xi32>
    %622 = arith.cmpi slt, %620, %621 : vector<1x256xi32>
    %623 = arith.andi %618, %622 : vector<1x256xi1>
    %cst_117 = arith.constant 0.000000e+00 : f32
    %624 = vector.broadcast %cst_117 : f32 to vector<1x256xf32>
    %625 = arith.select %623, %614, %624 : vector<1x256xi1>, vector<1x256xf32>
    %626 = arith.addf %584, %625 : vector<1x256xf32>
    %cst_118 = arith.constant 0.000000e+00 : f32
    %627 = vector.broadcast %cst_118 : f32 to vector<1x256xf32>
    %c55 = arith.constant 55 : index
    %628 = memref.load %arg1[%c55] : memref<98xf32, #tpu.memory_space<smem>>
    %629 = vector.broadcast %628 : f32 to vector<1x256xf32>
    %630 = arith.mulf %629, %346 : vector<1x256xf32>
    %631 = arith.addf %627, %630 : vector<1x256xf32>
    %c62 = arith.constant 62 : index
    %632 = memref.load %arg1[%c62] : memref<98xf32, #tpu.memory_space<smem>>
    %633 = vector.broadcast %632 : f32 to vector<1x256xf32>
    %634 = arith.mulf %633, %354 : vector<1x256xf32>
    %635 = arith.addf %631, %634 : vector<1x256xf32>
    %c69 = arith.constant 69 : index
    %636 = memref.load %arg1[%c69] : memref<98xf32, #tpu.memory_space<smem>>
    %637 = vector.broadcast %636 : f32 to vector<1x256xf32>
    %638 = arith.mulf %637, %362 : vector<1x256xf32>
    %639 = arith.addf %635, %638 : vector<1x256xf32>
    %c76 = arith.constant 76 : index
    %640 = memref.load %arg1[%c76] : memref<98xf32, #tpu.memory_space<smem>>
    %641 = vector.broadcast %640 : f32 to vector<1x256xf32>
    %642 = arith.mulf %641, %3#1 : vector<1x256xf32>
    %643 = arith.addf %639, %642 : vector<1x256xf32>
    %c83 = arith.constant 83 : index
    %644 = memref.load %arg1[%c83] : memref<98xf32, #tpu.memory_space<smem>>
    %645 = vector.broadcast %644 : f32 to vector<1x256xf32>
    %646 = arith.mulf %645, %370 : vector<1x256xf32>
    %647 = arith.addf %643, %646 : vector<1x256xf32>
    %c90 = arith.constant 90 : index
    %648 = memref.load %arg1[%c90] : memref<98xf32, #tpu.memory_space<smem>>
    %649 = vector.broadcast %648 : f32 to vector<1x256xf32>
    %650 = arith.mulf %649, %378 : vector<1x256xf32>
    %651 = arith.addf %647, %650 : vector<1x256xf32>
    %c97 = arith.constant 97 : index
    %652 = memref.load %arg1[%c97] : memref<98xf32, #tpu.memory_space<smem>>
    %653 = vector.broadcast %652 : f32 to vector<1x256xf32>
    %654 = arith.mulf %653, %386 : vector<1x256xf32>
    %655 = arith.addf %651, %654 : vector<1x256xf32>
    %c253_i32_119 = arith.constant 253 : i32
    %656 = tpu.dynamic_rotate %655 by %c253_i32_119 dim 1 : vector<1x256xf32>, i32 -> vector<1x256xf32>
    %c3_i32_120 = arith.constant 3 : i32
    %657 = vector.broadcast %c3_i32_120 : i32 to vector<1x256xi32>
    %658 = arith.addi %7, %657 : vector<1x256xi32>
    %c0_i32_121 = arith.constant 0 : i32
    %659 = vector.broadcast %c0_i32_121 : i32 to vector<1x256xi32>
    %660 = arith.cmpi sge, %658, %659 : vector<1x256xi32>
    %c3_i32_122 = arith.constant 3 : i32
    %661 = vector.broadcast %c3_i32_122 : i32 to vector<1x256xi32>
    %662 = arith.addi %7, %661 : vector<1x256xi32>
    %c16_i32_123 = arith.constant 16 : i32
    %663 = vector.broadcast %c16_i32_123 : i32 to vector<1x256xi32>
    %664 = arith.cmpi slt, %662, %663 : vector<1x256xi32>
    %665 = arith.andi %660, %664 : vector<1x256xi1>
    %cst_124 = arith.constant 0.000000e+00 : f32
    %666 = vector.broadcast %cst_124 : f32 to vector<1x256xf32>
    %667 = arith.select %665, %656, %666 : vector<1x256xi1>, vector<1x256xf32>
    %668 = arith.addf %626, %667 : vector<1x256xf32>
    %669 = arith.negf %668 : vector<1x256xf32>
    %670 = math.exp %669 : vector<1x256xf32>
    %cst_125 = arith.constant 1.000000e+00 : f32
    %671 = vector.broadcast %cst_125 : f32 to vector<1x256xf32>
    %672 = arith.addf %671, %670 : vector<1x256xf32>
    %673 = arith.divf %671, %672 : vector<1x256xf32>
    %c0_126 = arith.constant 0 : index
    %c0_127 = arith.constant 0 : index
    %c0_128 = arith.constant 0 : index
    %674 = vector.load %arg3[%c0_126, %c0_127, %c0_128] : memref<1x4x256xf32, #tpu.memory_space<vmem>>, vector<1x4x256xf32>
    %675 = vector.shape_cast %674 : vector<1x4x256xf32> to vector<4x256xf32>
    %676 = vector.broadcast %673 : vector<1x256xf32> to vector<4x256xf32>
    %677 = arith.mulf %675, %676 : vector<4x256xf32>
    %c0_129 = arith.constant 0 : index
    %c0_130 = arith.constant 0 : index
    %c0_131 = arith.constant 0 : index
    %678 = vector.load %arg4[%c0_129, %c0_130, %c0_131] : memref<1x4x256xf32, #tpu.memory_space<vmem>>, vector<1x4x256xf32>
    %679 = vector.shape_cast %678 : vector<1x4x256xf32> to vector<4x256xf32>
    %680 = vector.shape_cast %677 : vector<4x256xf32> to vector<1x4x256xf32>
    tpu.vector_store %arg4[%c0_129, %c0_130, %c0_131], %680 {strides = array<i32>} : memref<1x4x256xf32, #tpu.memory_space<vmem>>, vector<1x4x256xf32>,
    return
  }
  func.func @transform_0(%arg0: i32, %arg1: memref<98xf32, #tpu.memory_space<smem>>) -> (i32, i32) {
    %c0_i32 = arith.constant 0 : i32
    %c0_i32_0 = arith.constant 0 : i32
    %c0_i32_1 = arith.constant 0 : i32
    return %c0_i32, %c0_i32_0 : i32, i32
  }
  func.func @transform_1(%arg0: i32, %arg1: memref<98xf32, #tpu.memory_space<smem>>) -> (i32, i32, i32) {
    %c0_i32 = arith.constant 0 : i32
    %c0_i32_0 = arith.constant 0 : i32
    %c0_i32_1 = arith.constant 0 : i32
    return %arg0, %c0_i32, %c0_i32_0 : i32, i32, i32
  }
  func.func @transform_2(%arg0: i32, %arg1: memref<98xf32, #tpu.memory_space<smem>>) -> (i32, i32, i32) {
    %c0_i32 = arith.constant 0 : i32
    %c0_i32_0 = arith.constant 0 : i32
    %c0_i32_1 = arith.constant 0 : i32
    return %arg0, %c0_i32, %c0_i32_0 : i32, i32, i32
  }
}

</mosaic_0001>

<bundles_post_ra>
// kernel: tpu_custom_call.1
= control target key start
LH: loop header
LB: loop body
LE: loop exit
PB: predicated region body
PF: predicated region fallthrough
CT: control target
= control target key end

     0   :  { %s3540_s0 = inlined_call_operand.hbm [shape: f32[98], index: 0, kind: input, shape index: {}]   ;;  %s3541_s1 = inlined_call_operand.vmem [shape: s32[1,256], index: 1, kind: input, shape index: {}]   ;;  %s3542_s2 = inlined_call_operand.hbm [shape: f32[2,4,256], index: 2, kind: input, shape index: {}]   ;;  %s3543_s3 = inlined_call_operand.hbm [shape: f32[2,4,256], index: 3, kind: output, shape index: {}]  }
   0x1   :  { %3689 = sst [smem:[#allocation115_spill]] %s3541_s1  ;;  %s1773_s14 = scalar_lea.hbm %s3540_s0, 16 }
   0x2   :  { %3690 = sst [smem:[#allocation116_spill]] %s3542_s2  ;;  %p1774_p0 = scmp.ne.s32.totalorder %s3540_s0, %s1773_s14 }
   0x3   :  { %3691 = sst [smem:[#allocation117_spill]] %s3543_s3  ;;  %p1777_p1 = scmp.lt.u32.totalorder %s1773_s14, %s3540_s0 }
   0x5   :  { %p1779_p2 = pnand %p1777_p1, %p1774_p0 }
   0x7   :  { %1782 = shalt.err (!%p1779_p2)  }
   0x8   :  { %s1907_s19 = smov [#allocation3]  }
   0x9   :  { %9 = dma.hbm_to_smem %s3540_s0, 16, %s1907_s19, [#allocation2] }
   0xa   :  { %1869 = dma.done.wait [#allocation2], 16 }
   0xb   :  { %1870 = vsyncadd [#allocation2], 4294967280 }
   0xc   :  { %11 = sfence }
   0xd   :  { %12 = vsyncpa [#allocation5], 0 }
   0xe   :  { %14 = vsyncpa [#allocation5 + $0x1], 0 }
   0xf   :  { %15 = vsyncpa [#allocation6], 0 }
  0x10   :  { %17 = vsyncpa [#allocation6 + $0x1], 0  ;;  %s1955_s22 = smov 0   ;;  %s1957_s23 = smov 0  }
  0x11   :  { %s1959_s24 = smov 0   ;;  %s1961_s25 = smov 0  }
  0x12 LB: > { %3692 = sst [smem:[#allocation11_spill]] %s1881_s22  ;;  %s1976_s0 = sadd.s32 4294967295, %s1893_s25   ;;  %s1893_s25 = sphi %s1961_s25, %s4104_s25   ;;  %s1889_s24 = sphi %s1959_s24, %s4107_s24   ;;  %s1885_s23 = sphi %s1957_s23, %s4106_s23   ;;  %s1881_s22 = sphi %s1955_s22, %s4105_s22  }
  0x13   : > { %3693 = sst [smem:[#allocation12_spill]] %s1885_s23  ;;  %s1568_s26 = sadd.s32 4294967294, %s1893_s25  }
  0x14   : > { %3694 = sst [smem:[#allocation13_spill]] %s1889_s24  ;;  %s1980_s27 = sadd.s32 1, %s1893_s25  }
  0x15   : > { %3695 = sst [smem:[#allocation14_spill]] %s1893_s25  ;;  %s51_s28 = sadd.s32 1, %s1889_s24 }
  0x16   : > { %3696 = sst [smem:[#allocation15_spill]] %s1976_s0  ;;  %s48_s29 = ssub.s32 %s1893_s25, %s1980_s27 }
  0x17   : > { %3697 = sst [smem:[#allocation16_spill]] %s1980_s27  ;;  %p58_p3 = scmp.ne.s32.totalorder %s1889_s24, %s1885_s23 }
  0x18   : > { %p49_p4 = scmp.eq.s32.totalorder %s48_s29, 0  ;;  %p59_p5 = scmp.eq.s32.totalorder %s1893_s25, 0 }
  0x19   : > { %p64_p6 = scmp.ne.s32.totalorder %s1885_s23, %s1881_s22  ;;  %p65_p7 = scmp.eq.s32.totalorder %s1976_s0, 0 }
  0x1a   : > { %s1992_s30 = scalar_select %p49_p4, %s1889_s24, %s51_s28  }
  0x1b   : > { %p1994_p8 = por %p59_p5, %p58_p3  ;;  %p1998_p9 = por %p65_p7, %p64_p6 }
  0x1c   : > { %3698 = sst [smem:[#allocation17_spill]] %s1992_s30  ;;  %p88_p10 = scmp.eq.s32.totalorder %s1976_s0, 1 }
  0x1d   : > { %p94_p11 = scmp.eq.s32.totalorder %s1568_s26, 1  ;;  %p1697_p13 = scmp.lt.s32.totalorder %s1893_s25, 2 }
  0x1e   : > { %p2005_p0 = por %p88_p10, %p58_p3  ;;  %s117_s8 = sand.u32 1, %s1889_s24  }
  0x1f   : > { %p2009_p1 = por %p94_p11, %p64_p6  ;;  %s1682_s9 = sshll.u32 %s1893_s25, 7 }
  0x20   : > { %s3701_s6 = scalar_select %p2005_p0, 1, 0 }
  0x21   : > { %s3703_s7 = scalar_select %p2009_p1, 1, 0 }
  0x22   : > { %3702 = sst [smem:[#allocation18_spill]] %s3701_s6  ;;  %s1571_s10 = sshll.u32 %s117_s8, 3 }
  0x23   : > { %3704 = sst [smem:[#allocation19_spill]] %s3703_s7  ;;  %s3705_s2 = sld [smem:[#allocation116_spill]] }
  0x24   : > { %s121_s14 = scalar_lea.vmem [#allocation4], %s1571_s10  ;;  %p2022_p2 = pnand %p1697_p13, %p1994_p8 }
  0x25   : > { %s129_s15 = sshll.u32 %s121_s14, 4  ;;  %s118_s17 = scalar_lea.sflag [#allocation5], %s117_s8  ;;  %s2026_s15 = int_to_ptr.vmem [resolvable:$true] %s129_s15 }
  0x26   : > { %p1785_p6 = pneg %p2022_p2 }
  0x29   : > { %s2018_s13 = scalar_lea.hbm %s3705_s2, %s1682_s9  ;;  %s1788_s21 = scalar_lea.hbm %s3705_s2, 256 }
  0x2a   : > { %s1783_s18 = scalar_lea.hbm %s2018_s13, 128  ;;  %p1789_p8 = scmp.lt.u32.totalorder %s2018_s13, %s3705_s2 }
  0x2b   : > { %p1784_p5 = scmp.ne.s32.totalorder %s2018_s13, %s1783_s18  ;;  %p1790_p11 = scmp.lt.u32.totalorder %s1788_s21, %s1783_s18 }
  0x2c   : > { %p1792_p12 = scmp.lt.u32.totalorder %s1783_s18, %s2018_s13 }
  0x2d   : > { %p1786_p7 = pnand %p1785_p6, %p1784_p5  ;;  %p1791_p13 = por %p1790_p11, %p1789_p8 }
  0x2f   : > { %p1787_p10 = pneg %p1786_p7  ;;  %p1793_p3 = por %p1792_p12, %p1791_p13 }
  0x31   : > { %p1794_p4 = pnand %p1793_p3, %p1787_p10 }
  0x33   : > { %1797 = shalt.err (!%p1794_p4)
}
  0x34   : > { %s1798_s29 = scalar_lea.vmem %s2026_s15, 128  ;;  %s1908_s4 = smov [#allocation4]  }
  0x35   : > { %p1799_p5 = scmp.ne.s32.totalorder %s2026_s15, %s1798_s29  ;;  %s1803_s8 = sshll.u32 %s1908_s4, 4  ;;  %s1804_s8 = int_to_ptr.vmem [resolvable:$false] %s1803_s8 }
  0x36   : > { %s1805_s9 = scalar_lea.vmem %s1804_s8, 256  ;;  %p1806_p0 = scmp.lt.s32.totalorder %s2026_s15, %s1804_s8 }
  0x37   : > { %p1801_p7 = pnand %p1799_p5, %p1785_p6  ;;  %p1807_p8 = scmp.lt.s32.totalorder %s1805_s9, %s1798_s29 }
  0x39   : > { %p1802_p1 = pneg %p1801_p7  ;;  %p1808_p11 = por %p1807_p8, %p1806_p0 }
  0x3b   : > { %p1809_p12 = pnand %p1808_p11, %p1802_p1 }
  0x3d   : > { %1812 = shalt.err (!%p1809_p12)
}
  0x3e   : > { %1692 = dma.hbm_to_vmem [thread:$0]  (!%p2022_p2), %s2018_s13, 128, %s2026_s15, %s118_s17  }
  0x3f   : > { %p3707_p3 = scmp.lt.s32.totalorder %s1893_s25, 3  ;;  %p3708_p4 = scmp.ge.s32.totalorder %s1893_s25, 1 }
  0x41   : > { %p135_p6 = pnand %p3708_p4, %p3707_p3 }
  0x43   : > { %138 = sbr.rel (%p135_p6) target bundleno = 522 (0x20a), region = 28 }
  0x4a   : > { %s2060_s10 = sand.u32 1, %s1885_s23  }
  0x4b   : > { %3709 = sst [smem:[#allocation20_spill]] %s2060_s10  ;;  %s1575_s11 = sshll.u32 %s2060_s10, 3 }
  0x4c   : > { %s141_s12 = scalar_lea.sflag [#allocation5], %s2060_s10  ;;  %s2064_s14 = scalar_lea.vmem [#allocation4], %s1575_s11 }
  0x4d   : > { %3710 = sst [smem:[#allocation21_spill]] %s2064_s14 }
  0x4e   : > { %1872 = dma.done.wait (%p1998_p9), %s141_s12, 128  }
  0x4f   : > { %1874 = vsyncadd (%p1998_p9), %s141_s12, 4294967168  ;;  %s2070_s13 = scalar_lea.vmem [#allocation7], %s1575_s11  ;;  %v1895_v0 = vmov -inf   ;;  %v1899_v1 = vmov 0.0   ;;  %s1903_s15 = smov 0  }
  0x50   : > { %3711 = sst [smem:[#allocation22_spill]] %s2070_s13 }
  0x51 LB: >> { %s173_s16 = sshra.s32 %s1905_s15, 2  ;;  %s176_s17 = sand.u32 3, %s1905_s15  ;;  %s1905_s15 = sphi %s1903_s15, %s170_s15   ;;  %v1901_v1 = vphi %v1899_v1, %v1900_v1   ;;  %v1897_v0 = vphi %v1895_v0, %v1896_v0  }
  0x52   : >> { %s1683_s18 = sshll.u32 %s173_s16, 3  ;;  %s170_s15 = sadd.s32 1, %s1905_s15  }
  0x53   : >> { %s179_s19 = sadd.s32 %s1683_s18, %s176_s17  ;;  %p167_p9 = scmp.ge.s32.totalorder %s170_s15, 4  }
  0x54   : >> { %s180_s20 = scalar_lea.vmem %s2064_s14, %s179_s19 [#allocation4]  ;;  %v185_v5 = vlaneseq (%p167_p9)  ;;  %s1909_s5 = smov (%p167_p9), 32   ;;  %v1915_v14 = vmov (%p167_p9), 1966171168  }
  0x55   : >> { %v181_v2 = vld [vmem:[%s180_s20] ss:$4 sm:$0x3]  ;;  %169 = sbr.rel (!%p167_p9) target bundleno = 81 (0x51), region = 81  ;;  %s1910_s21 = smov (%p167_p9), 48   ;;  %v2165_v15 = vunpack.c.l.s4 (%p167_p9), %v1915_v14 }
  0x56   : >> { %v182_v3 = vadd.f32 %v1901_v1, %v181_v2   ;;  %v2073_v0 = vmax.f32 %v1897_v0, %v181_v2   ;;  %v2079_v7 = vshrl.u32 (%p167_p9), %v185_v5, 7  ;;  %s1911_s26 = smov (%p167_p9), 16   ;;  %s1912_s28 = smov (%p167_p9), 112   ;;  %v2180_v16 = vand.u32 (%p167_p9), 127, %v185_v5 }
  0x57   : > { %s1913_s29 = smov (%p167_p9), 96   ;;  %s1914_s4 = smov (%p167_p9), 80   ;;  %3746 = vst [vmem:[#allocation56_spill] sm:$0xff] (%p167_p9), %v2165_v15 }
  0x58   : >> { %v3712_v4 = vmov %v2073_v0  ;;  %v1900_v1 = vmov %v182_v3   ;;  %v2076_v6 = vmul.f32 (%p167_p9), 0.25, %v182_v3  ;;  %3713 = vst [vmem:[#allocation23_spill] sm:$0xff] (%p167_p9), %v2079_v7  ;;  %v2082_v8 = vsub.s32 (%p167_p9), 0, %v2079_v7  ;;  %s2095_s8 = sld [smem:[#allocation3 + $0x7]] (%p167_p9)  ;;  %s2097_s9 = sld [smem:[#allocation3 + $0x8]] (%p167_p9) }
  0x59   : >> { %v1896_v0 = vmov %v3712_v4   ;;  %v2085_v9 = vsub.s32 (%p167_p9), 1, %v2079_v7  ;;  %s2099_s11 = sld [smem:[#allocation3 + $0x9]] (%p167_p9)  ;;  %s2101_s12 = sld [smem:[#allocation3 + $0xa]] (%p167_p9)  ;;  %v2209_v29 = vadd.s32 (%p167_p9), 128, %v2180_v16  ;;  %vm219_vm0 = vcmp.lt.s32.totalorder (%p167_p9), %v2180_v16, 32 }
  0x5a   : > { %v193_v10 = vrot.slane (%p167_p9), %v2076_v6, %v2082_v8  ;;  %v855_v13 = vrot.slane (%p167_p9), %v3712_v4, %v2082_v8  ;;  %s2103_s15 = sld [smem:[#allocation3 + $0xb]] (%p167_p9)  ;;  %s2105_s16 = sld [smem:[#allocation3 + $0xc]] (%p167_p9)  ;;  %vm222_vm1 = vcmp.ge.s32.totalorder (%p167_p9), %v2180_v16, 32  ;;  %vm204_vm2 = vcmp.lt.s32.totalorder (%p167_p9), %v2180_v16, 48 }
  0x5b   : > { %v197_v11 = vrot.slane (%p167_p9), %v2076_v6, %v2085_v9  ;;  %v859_v12 = vrot.slane (%p167_p9), %v3712_v4, %v2085_v9  ;;  %s2107_s17 = sld [smem:[#allocation3 + $0xd]] (%p167_p9)  ;;  %s2109_s18 = sld [smem:[#allocation3]] (%p167_p9)  ;;  %vm207_vm3 = vcmp.ge.s32.totalorder (%p167_p9), %v2180_v16, 48  ;;  %vm232_vm4 = vcmp.lt.s32.totalorder (%p167_p9), %v2180_v16, 16 }
  0x5c   : > { %215 = vrot.lane.b32.xlu1 %v193_v10, %s1909_s5  ;;  %200 = vrot.lane.b32.xlu0 %v193_v10, %s1910_s21  ;;  %s2111_s19 = sld [smem:[#allocation3 + $0x1]]  ;;  %s2113_s20 = sld [smem:[#allocation3 + $0x2]]  ;;  %vm245_vm5 = vcmp.lt.s32.totalorder %v2180_v16, 112  ;;  %vm235_vm6 = vcmp.ge.s32.totalorder %v2180_v16, 16  ;;  %vm251_vm7 = vcmp.lt.s32.totalorder %v2209_v29, 240  ;;  %vm260_vm8 = vcmp.lt.s32.totalorder %v2180_v16, 96 }
  0x5d   : > { %s2127_s2 = sld [smem:[#allocation3 + $0x1f]]  ;;  %s2129_s30 = sld [smem:[#allocation3 + $0x26]]  ;;  %vm264_vm9 = vcmp.lt.s32.totalorder %v2209_v29, 224  ;;  %vm273_vm10 = vcmp.lt.s32.totalorder %v2180_v16, 80  ;;  %vm277_vm11 = vcmp.lt.s32.totalorder %v2209_v29, 208  ;;  %vm338_vm12 = vcmp.lt.s32.totalorder %v2180_v16, 3 }
  0x5e   : > { %3714 = sst [smem:[#allocation24_spill]] %s2095_s8  ;;  %s2131_s24 = sld [smem:[#allocation3 + $0xe]]  ;;  %v289_v19 = vstv %s2095_s8  ;;  %v372_v20 = vstv %s2097_s9  ;;  %vm421_vm13 = vcmp.lt.s32.totalorder %v2180_v16, 2 }
  0x5f   : > { %3715 = sst [smem:[#allocation25_spill]] %s2097_s9  ;;  %s2133_s23 = sld [smem:[#allocation3 + $0x15]]  ;;  %v455_v21 = vstv %s2099_s11  ;;  %v538_v22 = vstv %s2101_s12 }
  0x60   : > { %217 = vrot.lane.b32.xlu1 %v197_v11, %s1909_s5  ;;  %202 = vrot.lane.b32.xlu0 %v197_v11, %s1910_s21  ;;  %3716 = sst [smem:[#allocation26_spill]] %s2099_s11  ;;  %s2135_s27 = sld [smem:[#allocation3 + $0x1c]]  ;;  %v609_v23 = vstv %s2103_s15  ;;  %v692_v24 = vstv %s2105_s16 }
  0x61   : > { %3717 = sst [smem:[#allocation27_spill]] %s2101_s12  ;;  %s2137_s25 = sld [smem:[#allocation3 + $0x23]]  ;;  %v775_v26 = vstv %s2107_s17  ;;  %v283_v27 = vstv %s2109_s18 }
  0x62   : > { %3718 = sst [smem:[#allocation28_spill]] %s2103_s15  ;;  %s2139_s7 = sld [smem:[#allocation3 + $0xf]]  ;;  %v366_v30 = vstv %s2111_s19  ;;  %v449_v31 = vstv %s2113_s20 }
  0x63   : > { %3719 = sst [smem:[#allocation29_spill]] %s2105_s16  ;;  %s2141_s22 = sld [smem:[#allocation3 + $0x2d]]  ;;  %v566_v39 = vstv %s2127_s2 }
  0x64   : > { %230 = vrot.lane.b32.xlu1 %v197_v11, %s1911_s26  ;;  %228 = vrot.lane.b32.xlu0 %v193_v10, %s1911_s26  ;;  %3720 = sst [smem:[#allocation30_spill]] %s2107_s17  ;;  %s2143_s3 = sld [smem:[#allocation3 + $0x2a]]  ;;  %v3669_v41 = vstv %s2131_s24 }
  0x65   : > { %3721 = sst [smem:[#allocation31_spill]] %s2109_s18  ;;  %s2145_s6 = sld [smem:[#allocation3 + $0x31]]  ;;  %v301_v25 = vstv %s2133_s23 }
  0x66   : > { %3722 = sst [smem:[#allocation32_spill]] %s2111_s19  ;;  %s2147_s10 = sld [smem:[#allocation3 + $0x32]]  ;;  %v2226_v36 = vmul.f32 %v301_v25, %v2076_v6  ;;  %v3671_v44 = vstv %s2135_s27 }
  0x67   : > { %3723 = sst [smem:[#allocation33_spill]] %s2113_s20  ;;  %s2149_s13 = sld [smem:[#allocation3 + $0x33]] }
  0x68   : > { %243 = vrot.lane.b32.xlu1 %v197_v11, %s1912_s28  ;;  %241 = vrot.lane.b32.xlu0 %v193_v10, %s1912_s28  ;;  %3729 = sst [smem:[#allocation39_spill]] %s2127_s2  ;;  %s2151_s0 = sld [smem:[#allocation3 + $0x34]] }
  0x69   : > { %3730 = sst [smem:[#allocation40_spill]] %s2129_s30  ;;  %s2153_s14 = sld [smem:[#allocation3 + $0x35]] }
  0x6a   : > { %3731 = sst [smem:[#allocation41_spill]] %s2131_s24  ;;  %s2155_s1 = sld [smem:[#allocation3 + $0x36]] }
  0x6b   : > { %3732 = sst [smem:[#allocation42_spill]] %s2135_s27  ;;  %s2211_s15 = sld [smem:[#allocation3 + $0x12]] }
  0x6c   : > { %258 = vrot.lane.b32.xlu1 %v197_v11, %s1913_s29  ;;  %256 = vrot.lane.b32.xlu0 %v193_v10, %s1913_s29  ;;  %3733 = sst [smem:[#allocation43_spill]] %s2137_s25  ;;  %s2157_s25 = sld [smem:[#allocation3 + $0x37]] }
  0x6d   : > { %3734 = sst [smem:[#allocation44_spill]] %s2139_s7  ;;  %s2159_s7 = sld [smem:[#allocation3 + $0x16]] }
  0x6e   : > { %3735 = sst [smem:[#allocation45_spill]] %s2141_s22  ;;  %s2161_s22 = sld [smem:[#allocation3 + $0x1d]] }
  0x6f   : > { %3736 = sst [smem:[#allocation46_spill]] %s2143_s3  ;;  %s2163_s3 = sld [smem:[#allocation3 + $0x10]] }
  0x70   : > { %271 = vrot.lane.b32.xlu1 %v197_v11, %s1914_s4  ;;  %269 = vrot.lane.b32.xlu0 %v193_v10, %s1914_s4  ;;  %3737 = sst [smem:[#allocation47_spill]] %s2145_s6  ;;  %s2213_s23 = sld [smem:[#allocation3 + $0x19]] }
  0x71   : > { %3738 = sst [smem:[#allocation48_spill]] %s2147_s10  ;;  %s2219_s17 = sld [smem:[#allocation3 + $0x2c]] }
  0x72   : > { %3739 = sst [smem:[#allocation49_spill]] %s2149_s13  ;;  %s2177_s13 = sld [smem:[#allocation3 + $0x3b]] }
  0x73   : > { %3740 = sst [smem:[#allocation50_spill]] %s2151_s0  ;;  %s2167_s0 = sld [smem:[#allocation3 + $0x24]]  ;;  %v384_v37 = vstv %s2159_s7 }
  0x74   : > { %864 = vrot.lane.b32.xlu1 %v859_v12, %s1910_s21  ;;  %862 = vrot.lane.b32.xlu0 %v855_v13, %s1910_s21  ;;  %s2117_s21 = sld [smem:[#allocation3 + $0x4]]  ;;  %3741 = sst [smem:[#allocation51_spill]] %s2153_s14  ;;  %v2255_v49 = vmul.f32 %v384_v37, %v2076_v6 }
  0x75   : > { %3742 = sst [smem:[#allocation52_spill]] %s2155_s1  ;;  %s2169_s14 = sld [smem:[#allocation3 + $0x17]] }
  0x76   : > { %3743 = sst [smem:[#allocation53_spill]] %s2157_s25  ;;  %s2171_s1 = sld [smem:[#allocation3 + $0x38]]  ;;  %v621_v61 = vstv %s2213_s23 }
  0x77   : > { %3744 = sst [smem:[#allocation54_spill]] %s2161_s22  ;;  %s2173_s25 = sld [smem:[#allocation3 + $0x39]]  ;;  %v2312_v14 = vmul.f32 %v621_v61, %v2076_v6 }
  0x78   : > { %872 = vrot.lane.b32.xlu1 %v859_v12, %s1909_s5  ;;  %870 = vrot.lane.b32.xlu0 %v855_v13, %s1909_s5  ;;  %s2115_s5 = sld [smem:[#allocation3 + $0x3]]  ;;  %3745 = sst [smem:[#allocation55_spill]] %s2163_s3 }
  0x79   : > { %3747 = sst [smem:[#allocation57_spill]] %s2167_s0  ;;  %s2175_s22 = sld [smem:[#allocation3 + $0x3a]] }
  0x7a   : > { %3725 = sst [smem:[#allocation35_spill]] %s2117_s21  ;;  %s2183_s0 = sld [smem:[#allocation3 + $0x3c]]  ;;  %v603_v33 = vstv %s2117_s21 }
  0x7b   : > { %3749 = sst [smem:[#allocation59_spill]] %s2177_s13  ;;  %s2185_s3 = sld [smem:[#allocation3 + $0x3d]]  ;;  %v467_v45 = vstv %s2169_s14 }
  0x7c   : > { %880 = vrot.lane.b32.xlu1 %v859_v12, %s1911_s26  ;;  %878 = vrot.lane.b32.xlu0 %v855_v13, %s1911_s26  ;;  %s2119_s26 = sld [smem:[#allocation3 + $0x5]]  ;;  %s2193_s13 = sld [smem:[#allocation3 + $0x2b]]  ;;  %v2275_v57 = vmul.f32 %v467_v45, %v2076_v6 }
  0x7d   : > { %3755 = sst [smem:[#allocation65_spill]] %s2211_s15  ;;  %s2221_s18 = sld [smem:[#allocation3 + $0x20]] }
  0x7e   : > { %3724 = sst [smem:[#allocation34_spill]] %s2115_s5  ;;  %v532_v32 = vstv %s2115_s5  ;;  %s2231_s20 = sld [smem:[#allocation3 + $0x1a]] }
  0x7f   : > { %3748 = sst [smem:[#allocation58_spill]] %s2175_s22  ;;  %s2191_s22 = sld [smem:[#allocation3 + $0x3e]] }
  0x80   : > { %888 = vrot.lane.b32.xlu1 %v859_v12, %s1912_s28  ;;  %886 = vrot.lane.b32.xlu0 %v855_v13, %s1912_s28  ;;  %s2121_s28 = sld [smem:[#allocation3 + $0x6]]  ;;  %3756 = sst [smem:[#allocation66_spill]] %s2219_s17 }
  0x81   : > { %3750 = sst [smem:[#allocation60_spill]] %s2185_s3  ;;  %s2201_s3 = sld [smem:[#allocation3 + $0x25]] }
  0x82   : > { %3726 = sst [smem:[#allocation36_spill]] %s2119_s26  ;;  %v3668_v34 = vstv %s2119_s26  ;;  %s2229_s11 = sld [smem:[#allocation3 + $0x49]] }
  0x83   : > { %3752 = sst [smem:[#allocation62_spill]] %s2193_s13  ;;  %s2237_s21 = sld [smem:[#allocation3 + $0x42]] }
  0x84   : > { %896 = vrot.lane.b32.xlu1 %v859_v12, %s1913_s29  ;;  %894 = vrot.lane.b32.xlu0 %v855_v13, %s1913_s29  ;;  %s2123_s29 = sld [smem:[#allocation3 + $0x11]]  ;;  %s2257_s9 = sld [smem:[#allocation3 + $0x2e]]  ;;  %v704_v10 = vstv %s2231_s20 }
  0x85   : > { %3751 = sst [smem:[#allocation61_spill]] %s2191_s22  ;;  %s2249_s2 = sld [smem:[#allocation3 + $0x21]] }
  0x86   : > { %3727 = sst [smem:[#allocation37_spill]] %s2121_s28  ;;  %s2239_s28 = sld [smem:[#allocation3 + $0x13]] }
  0x87   : > { %3754 = sst [smem:[#allocation64_spill]] %s2201_s3  ;;  %s2259_s27 = sld [smem:[#allocation3 + $0x1b]] }
  0x88   : > { %904 = vrot.lane.b32.xlu1 %v859_v12, %s1914_s4  ;;  %902 = vrot.lane.b32.xlu0 %v855_v13, %s1914_s4  ;;  %s2125_s4 = sld [smem:[#allocation3 + $0x18]]  ;;  %3757 = sst [smem:[#allocation67_spill]] %s2221_s18  ;;  %v1163_v5 = vstv %s2229_s11  ;;  %v2331_v13 = vmul.f32 %v704_v10, %v2076_v6 }
  0x89   : > { %3761 = sst [smem:[#allocation68_spill]] %s2237_s21  ;;  %s2267_s19 = sld [smem:[#allocation3 + $0x50]]  ;;  %v2328_v61 = vmul.f32 %v1163_v5, %v3712_v4 }
  0x8a   : > { %3728 = sst [smem:[#allocation38_spill]] %s2123_s29  ;;  %v544_v38 = vstv %s2123_s29  ;;  %s2247_s29 = sld [smem:[#allocation3 + $0x27]] }
  0x8b   : > { %3767 = sst [smem:[#allocation71_spill]] %s2249_s2  ;;  %s2269_s16 = sld [smem:[#allocation3 + $0x14]] }
  0x8c   : > { %3763 = sst [smem:[#allocation69_spill]] %s2239_s28  ;;  %s2277_s2 = sld [smem:[#allocation3 + $0x28]] }
  0x8d   : > { %s2279_s26 = sld [smem:[#allocation3 + $0x22]]  ;;  %s2285_s10 = sld [smem:[#allocation3 + $0x2f]]  ;;  %v787_v0 = vstv %s2259_s27 }
  0x8e   : > { %v550_v17 = vstv %s2125_s4  ;;  %s2199_s4 = sld [smem:[#allocation3 + $0x1e]]  ;;  %s2295_s24 = sld [smem:[#allocation3 + $0x57]]  ;;  %v2360_v37 = vmul.f32 %v787_v0, %v2076_v6 }
  0x8f   : > { %v2206_v28 = vmul.f32 %v550_v17, %v2076_v6  ;;  %3772 = sst [smem:[#allocation72_spill]] %s2267_s19  ;;  %s2297_s5 = sld [smem:[#allocation3 + $0x29]] }
  0x90   : > { %3765 = sst [smem:[#allocation70_spill]] %s2247_s29  ;;  %s2287_s30 = sld [smem:[#allocation3 + $0x46]] }
  0x91   : > { %3773 = sst [smem:[#allocation73_spill]] %s2269_s16  ;;  %s3778_s16 = sld [smem:[#allocation58_spill]] }
  0x92   : > { %3776 = sst [smem:[#allocation74_spill]] %s2277_s2  ;;  %s2303_s23 = sld [smem:[#allocation3 + $0x5e]] }
  0x93   : > { %3777 = sst [smem:[#allocation75_spill]] %s2279_s26  ;;  %s2305_s14 = sld [smem:[#allocation3 + $0x30]] }
  0x94   : > { %3753 = sst [smem:[#allocation63_spill]] %s2199_s4  ;;  %s2314_s12 = sld [smem:[#allocation3 + $0x3f]] }
  0x95   : > { %3781 = sst [smem:[#allocation58_spill]] %s2297_s5  ;;  %s2316_s11 = sld [smem:[#allocation3 + $0x47]] }
  0x96   : > { %s2322_s20 = sld [smem:[#allocation3 + $0x4d]]  ;;  %s2324_s6 = sld [smem:[#allocation3 + $0x54]]  ;;  %v929_v5 = vstv %s2287_s30 }
  0x97   : > { %s2334_s7 = sld [smem:[#allocation3 + $0x5b]]  ;;  %s2336_s8 = sld [smem:[#allocation3 + $0x48]]  ;;  %v2390_v10 = vmul.f32 %v929_v5, %v3712_v4 }
  0x98   : > { %s2343_s22 = sld [smem:[#allocation3 + $0x40]]  ;;  %s2345_s13 = sld [smem:[#allocation3 + $0x4a]] }
  0x99   : > { %3782 = sst [smem:[#allocation76_spill]] %s2305_s14  ;;  %s2353_s27 = sld [smem:[#allocation3 + $0x4e]]  ;;  %3788 = vst [vmem:[#allocation80_spill] sm:$0xff] %v2390_v10 }
  0x9a   : > { %3783 = sst [smem:[#allocation77_spill]] %s2314_s12  ;;  %s2355_s4 = sld [smem:[#allocation3 + $0x55]] }
  0x9b   : > { %s2363_s17 = sld [smem:[#allocation3 + $0x5c]]  ;;  %s2365_s18 = sld [smem:[#allocation3 + $0x4b]]  ;;  %v1007_v3 = vstv %s2316_s11 }
  0x9c   : > { %s2374_s28 = sld [smem:[#allocation3 + $0x41]]  ;;  %s2376_s30 = sld [smem:[#allocation3 + $0x4c]]  ;;  %v2421_v1 = vmul.f32 %v1007_v3, %v3712_v4 }
  0x9d   : > { %s2383_s21 = sld [smem:[#allocation3 + $0x43]]  ;;  %s2385_s29 = sld [smem:[#allocation3 + $0x44]]  ;;  %v1085_v0 = vstv %s2336_s8 }
  0x9e   : > { %3784 = sst [smem:[#allocation78_spill]] %s2343_s22  ;;  %s2393_s19 = sld [smem:[#allocation3 + $0x4f]]  ;;  %3791 = vst [vmem:[#allocation83_spill] sm:$0xff] %v2421_v1  ;;  %v1234_v6 = vstv %s2345_s13  ;;  %v2441_v18 = vmul.f32 %v1085_v0, %v3712_v4 }
  0x9f   : > { %s2395_s3 = sld [smem:[#allocation3 + $0x56]]  ;;  %s2403_s15 = sld [smem:[#allocation3 + $0x5d]]  ;;  %v2448_v63 = vmul.f32 %v1234_v6, %v3712_v4 }
  0xa0   : > { %s2405_s2 = sld [smem:[#allocation3 + $0x51]]  ;;  %s2412_s11 = sld [smem:[#allocation3 + $0x52]]  ;;  %3795 = vst [vmem:[#allocation87_spill] sm:$0xff] %v2441_v18 }
  0xa1   : > { %s2414_s26 = sld [smem:[#allocation3 + $0x45]]  ;;  %s2424_s14 = sld [smem:[#allocation3 + $0x58]]  ;;  %v1312_v25 = vstv %s2365_s18  ;;  %3796 = vst [vmem:[#allocation88_spill] sm:$0xff] %v2448_v63 }
  0xa2   : > { %s2426_s8 = sld [smem:[#allocation3 + $0x53]]  ;;  %s2433_s5 = sld [smem:[#allocation3 + $0x5f]]  ;;  %v1390_v3 = vstv %s2376_s30  ;;  %v2465_v2 = vmul.f32 %v1312_v25, %v3712_v4 }
  0xa3   : > { %3787 = sst [smem:[#allocation79_spill]] %s2385_s29  ;;  %s2435_s12 = sld [smem:[#allocation3 + $0x59]]  ;;  %v2472_v5 = vmul.f32 %v1390_v3, %v3712_v4 }
  0xa4   : > { %s2450_s13 = sld [smem:[#allocation3 + $0x60]]  ;;  %s2453_s22 = sld [smem:[#allocation3 + $0x5a]]  ;;  %3799 = vst [vmem:[#allocation91_spill] sm:$0xff] %v2465_v2 }
  0xa5   : > { %3800 = vst [vmem:[#allocation92_spill] sm:$0xff] %v2472_v5  ;;  %s3822_s30 = sld [smem:[#allocation45_spill]]  ;;  %s3831_s29 = sld [smem:[#allocation46_spill]] }
  0xa6   : > { %3789 = sst [smem:[#allocation81_spill]] %s2412_s11  ;;  %s3816_s11 = sld [smem:[#allocation41_spill]] }
  0xa7   : > { %3790 = sst [smem:[#allocation82_spill]] %s2414_s26  ;;  %s3825_s18 = sld [smem:[#allocation37_spill]] }
  0xa8   : > { %3792 = sst [smem:[#allocation84_spill]] %s2426_s8  ;;  %s3818_s8 = sld [smem:[#allocation40_spill]] }
  0xa9   : > { %3793 = sst [smem:[#allocation85_spill]] %s2433_s5  ;;  %s3836_s26 = sld [smem:[#allocation48_spill]] }
  0xaa   : > { %3794 = sst [smem:[#allocation86_spill]] %s2435_s12  ;;  %s3813_s12 = sld [smem:[#allocation36_spill]] }
  0xab   : > { %3797 = sst [smem:[#allocation89_spill]] %s2450_s13  ;;  %s3817_s5 = sld [smem:[#allocation42_spill]] }
  0xac   : > { %3798 = sst [smem:[#allocation90_spill]] %s2453_s22  ;;  %s3819_s13 = sld [smem:[#allocation43_spill]] }
  0xad   : > { %s3839_s22 = sld [smem:[#allocation49_spill]] }
  0xce   : > { %v216_v48 = vpop.permute.xlu1 %215  ;;  %v201_v17 = vpop.permute.xlu0 %200 }
  0xd2   : > { %v218_v3 = vpop.permute.xlu1 %217  ;;  %v203_v62 = vpop.permute.xlu0 %202 }
  0xd3   : > { %v220_v0 = vsel %vm219_vm0, %v216_v48, %v218_v3  ;;  %v221_v45 = vsel %vm219_vm0, %v218_v3, %v216_v48  ;;  %v206_v4 = vsel %vm204_vm2, %v203_v62, %v201_v17  ;;  %v2524_v25 = vsel %vm204_vm2, %v201_v17, %v203_v62 }
  0xd4   : > { %v226_v11 = vsel %vm222_vm1, %v221_v45, 0.0  ;;  %v2512_v3 = vmul.f32 %v289_v19, %v220_v0  ;;  %v2516_v12 = vmul.f32 %v372_v20, %v220_v0  ;;  %v2520_v45 = vmul.f32 %v455_v21, %v220_v0 }
  0xd5   : > { %v290_v48 = vmul.f32 %v289_v19, %v226_v11  ;;  %v2531_v60 = vmul.f32 %v372_v20, %v226_v11  ;;  %v2535_v6 = vmul.f32 %v455_v21, %v226_v11  ;;  %v539_v59 = vmul.f32 %v538_v22, %v226_v11 }
  0xd6   : > { %v231_v58 = vpop.permute.xlu1 %230  ;;  %v229_v62 = vpop.permute.xlu0 %228  ;;  %v540_v17 = vmul.f32 %v538_v22, %v220_v0  ;;  %v2543_v19 = vmul.f32 %v609_v23, %v226_v11  ;;  %v2547_v20 = vmul.f32 %v609_v23, %v220_v0  ;;  %v213_v21 = vsel %vm207_vm3, %v206_v4, 0.0 }
  0xd7   : > { %v2553_v56 = vmul.f32 %v692_v24, %v226_v11  ;;  %v2557_v55 = vmul.f32 %v692_v24, %v220_v0  ;;  %v2561_v54 = vmul.f32 %v775_v26, %v226_v11  ;;  %v2565_v22 = vmul.f32 %v775_v26, %v220_v0 }
  0xd8   : > { %v284_v23 = vmul.f32 %v283_v27, %v213_v21  ;;  %v285_v4 = vmul.f32 %v283_v27, %v2524_v25  ;;  %v533_v50 = vmul.f32 %v532_v32, %v213_v21  ;;  %v534_v24 = vmul.f32 %v532_v32, %v2524_v25 }
  0xd9   : > { %v2581_v11 = vmul.f32 %v366_v30, %v213_v21  ;;  %v2586_v26 = vmul.f32 %v366_v30, %v2524_v25  ;;  %v2590_v0 = vmul.f32 %v449_v31, %v213_v21  ;;  %v2595_v27 = vmul.f32 %v449_v31, %v2524_v25 }
  0xda   : > { %v244_v32 = vpop.permute.xlu1 %243  ;;  %v242_v53 = vpop.permute.xlu0 %241  ;;  %v541_v52 = vadd.f32 %v539_v59, %v533_v50  ;;  %v542_v35 = vadd.f32 %v540_v17, %v534_v24  ;;  %v2599_v46 = vmul.f32 %v603_v33, %v213_v21  ;;  %v2604_v30 = vmul.f32 %v603_v33, %v2524_v25 }
  0xdb   : > { %v2608_v47 = vsel %vm232_vm4, %v229_v62, %v231_v58  ;;  %v234_v31 = vsel %vm232_vm4, %v231_v58, %v229_v62  ;;  %v2614_v50 = vsel %vm245_vm5, %v242_v53, %v244_v32  ;;  %v247_v59 = vsel %vm245_vm5, %v244_v32, %v242_v53 }
  0xdc   : > { %v2620_v17 = vmul.f32 %v3668_v34, %v213_v21  ;;  %v2624_v33 = vsel %vm235_vm6, %v234_v31, 0.0  ;;  %v546_v24 = vmul.f32 %v544_v38, %v2608_v47  ;;  %v2631_v58 = vsel %vm251_vm7, %v247_v59, 0.0 }
  0xdd   : > { %v545_v62 = vmul.f32 %v544_v38, %v2624_v33  ;;  %v567_v53 = vmul.f32 %v566_v39, %v2614_v50  ;;  %v292_v51 = vadd.f32 %v290_v48, %v284_v23  ;;  %v296_v43 = vmul.f32 %v3669_v41, %v2624_v33 }
  0xde   : > { %v259_v32 = vpop.permute.xlu1 %258  ;;  %v257_v31 = vpop.permute.xlu0 %256  ;;  %v548_v40 = vadd.f32 %v546_v24, %v542_v35  ;;  %v568_v59 = vmul.f32 %v566_v39, %v2631_v58  ;;  %v318_v35 = vmul.f32 %v3671_v44, %v2614_v50  ;;  %v3820_v24 = vstv %s3813_s12  ;;  %s3834_s12 = sld [smem:[#allocation47_spill]] }
  0xdf   : > { %v2647_v38 = vsel %vm260_vm8, %v257_v31, %v259_v32  ;;  %v262_v42 = vsel %vm260_vm8, %v259_v32, %v257_v31  ;;  %v547_v34 = vadd.f32 %v545_v62, %v541_v52  ;;  %v298_v23 = vadd.f32 %v296_v43, %v292_v51 }
  0xe0   : > { %v2653_v48 = vsel %vm264_vm9, %v262_v42, 0.0  ;;  %v2661_v39 = vmul.f32 %v3820_v24, %v2524_v25  ;;  %v3821_v41 = vrot.slane %v2206_v28, %v2085_v9  ;;  %v3823_v32 = vstv %s3818_s8  ;;  %s3851_s8 = sld [smem:[#allocation52_spill]] }
  0xe1   : > { %v573_v52 = vmul.f32 %v3823_v32, %v2647_v38  ;;  %v3824_v62 = vmov %v3823_v32  ;;  %v3826_v43 = vrot.slane %v2206_v28, %v2082_v8  ;;  %v3827_v44 = vrot.slane %v2226_v36, %v2082_v8 }
  0xe2   : > { %v564_v15 = vadd.f32 %v3821_v41, %v548_v40  ;;  %v574_v42 = vmul.f32 %v3824_v62, %v2653_v48  ;;  %v272_v31 = vpop.permute.xlu1 %271  ;;  %v270_v24 = vpop.permute.xlu0 %269  ;;  %v3828_v40 = vstv %s3819_s13  ;;  %v3829_v32 = vstv %s3816_s11  ;;  %s3842_s11 = sld [smem:[#allocation50_spill]] }
  0xe3   : > { %v563_v51 = vadd.f32 %v3826_v43, %v547_v34  ;;  %v314_v7 = vadd.f32 %v3827_v44, %v298_v23  ;;  %v324_v41 = vmul.f32 %v3828_v40, %v2647_v38  ;;  %v297_v5 = vmul.f32 %v3829_v32, %v2608_v47 }
  0xe4   : > { %v570_v2 = vadd.f32 %v568_v59, %v564_v15  ;;  %v2686_v28 = vsel %vm273_vm10, %v270_v24, %v272_v31  ;;  %v275_v34 = vsel %vm273_vm10, %v272_v31, %v270_v24  ;;  %v293_v62 = vadd.f32 %v2512_v3, %v285_v4 }
  0xe5   : > { %v569_v43 = vadd.f32 %v567_v53, %v563_v51  ;;  %v2693_v44 = vsel %vm277_vm11, %v275_v34, 0.0  ;;  %v3830_v23 = vstv %s3822_s30  ;;  %v320_v59 = vadd.f32 %v318_v35, %v314_v7  ;;  %s3866_s30 = sld [smem:[#allocation59_spill]] }
  0xe6   : > { %v579_v15 = vmul.f32 %v3830_v23, %v2686_v28  ;;  %v3832_v40 = vstv %s3825_s18  ;;  %v576_v63 = vadd.f32 %v574_v42, %v570_v2  ;;  %v3833_v18 = vmov %v3830_v23  ;;  %v865_v51 = vpop.permute.xlu1 %864  ;;  %v863_v24 = vpop.permute.xlu0 %862  ;;  %s1916_s18 = smov 3  }
  0xe7   : > { %v2700_v32 = vmul.f32 %v3832_v40, %v213_v21  ;;  %v580_v1 = vmul.f32 %v3833_v18, %v2693_v44  ;;  %v299_v31 = vadd.f32 %v297_v5, %v293_v62  ;;  %v3835_v3 = vmov %v3832_v40 }
  0xe8   : > { %v2708_v4 = vmul.f32 %v3835_v3, %v2524_v25  ;;  %v575_v53 = vadd.f32 %v573_v52, %v569_v43  ;;  %v3837_v7 = vstv %s3817_s5  ;;  %v3838_v2 = vstv %s3819_s13  ;;  %s3844_s5 = sld [smem:[#allocation51_spill]]  ;;  %s3854_s13 = sld [smem:[#allocation53_spill]] }
  0xe9   : > { %v319_v21 = vmul.f32 %v3837_v7, %v2631_v58  ;;  %v325_v18 = vmul.f32 %v3838_v2, %v2653_v48  ;;  %v2716_v5 = vadd.f32 %v580_v1, %v576_v63  ;;  %v866_v25 = vsel %vm204_vm2, %v863_v24, %v865_v51 }
  0xea   : > { %v867_v35 = vsel %vm204_vm2, %v865_v51, %v863_v24  ;;  %v3841_v52 = vstv %s3831_s29  ;;  %v2725_v34 = vadd.f32 %v579_v15, %v575_v53  ;;  %v326_v63 = vadd.f32 %v324_v41, %v320_v59  ;;  %s3875_s29 = sld [smem:[#allocation44_spill]] }
  0xeb   : > { %3840 = vst [vmem:[#allocation93_spill] sm:$0xff] %v2716_v5  ;;  %v330_v42 = vmul.f32 %v3841_v52, %v2686_v28  ;;  %v868_v62 = vsel %vm207_vm3, %v867_v35, 0.0  ;;  %v3845_v1 = vrot.slane %v2226_v36, %v2085_v9  ;;  %v3846_v23 = vstv %s3834_s12  ;;  %s3881_s12 = sld [smem:[#allocation54_spill]] }
  0xec   : > { %3843 = vst [vmem:[#allocation94_spill] sm:$0xff] %v2725_v34  ;;  %v2734_v40 = vmul.f32 %v3846_v23, %v866_v25  ;;  %v3848_v3 = vstv %s3836_s26  ;;  %v3850_v24 = vmov %v3841_v52  ;;  %v375_v53 = vadd.f32 %v2531_v60, %v2581_v11  ;;  %s3883_s26 = sld [smem:[#allocation57_spill]] }
  0xed   : > { %v315_v43 = vadd.f32 %v3845_v1, %v299_v31  ;;  %v2738_v51 = vmul.f32 %v3848_v3, %v866_v25  ;;  %v331_v15 = vmul.f32 %v3850_v24, %v2693_v44  ;;  %v3852_v7 = vmov %v3846_v23  ;;  %v873_v1 = vpop.permute.xlu1 %872  ;;  %v871_v23 = vpop.permute.xlu0 %870 }
  0xee   : > { %3847 = vst [vmem:[#allocation95_spill] sm:$0xff] %v2734_v40  ;;  %v2747_v41 = vmul.f32 %v3852_v7, %v868_v62  ;;  %v3853_v59 = vmov %v3848_v3  ;;  %v3856_v31 = vstv %s3839_s22  ;;  %v3860_v3 = vstv %s3842_s11  ;;  %s3886_s22 = sld [smem:[#allocation62_spill]]  ;;  %s3907_s11 = sld [smem:[#allocation66_spill]] }
  0xef   : > { %3849 = vst [vmem:[#allocation96_spill] sm:$0xff] %v2738_v51  ;;  %v2751_v36 = vmul.f32 %v3853_v59, %v868_v62  ;;  %v2755_v2 = vmul.f32 %v3856_v31, %v868_v62  ;;  %v3858_v35 = vmov %v3856_v31  ;;  %v1146_v24 = vmul.f32 %v3860_v3, %v868_v62 }
  0xf0   : > { %v2759_v52 = vmul.f32 %v3858_v35, %v866_v25  ;;  %v3861_v60 = vmov %v3860_v3  ;;  %v3862_v7 = vstv %s3844_s5  ;;  %v332_v31 = vadd.f32 %v330_v42, %v326_v63  ;;  %s3919_s5 = sld [smem:[#allocation72_spill]] }
  0xf1   : > { %3855 = vst [vmem:[#allocation97_spill] sm:$0xff] %v2751_v36  ;;  %3857 = vst [vmem:[#allocation98_spill] sm:$0xff] %v2755_v2  ;;  %v1147_v11 = vmul.f32 %v3861_v60, %v866_v25  ;;  %v2767_v34 = vmul.f32 %v3862_v7, %v868_v62  ;;  %v3864_v59 = vmov %v3862_v7  ;;  %v321_v35 = vadd.f32 %v319_v21, %v315_v43  ;;  %v881_v2 = vpop.permute.xlu1 %880 }
  0xf2   : > { %3859 = vst [vmem:[#allocation99_spill] sm:$0xff] %v2759_v52  ;;  %v2771_v5 = vmul.f32 %v3864_v59, %v866_v25  ;;  %v2775_v52 = vsel %vm219_vm0, %v871_v23, %v873_v1  ;;  %v875_v3 = vsel %vm219_vm0, %v873_v1, %v871_v23  ;;  %v3867_v60 = vstv %s3851_s8  ;;  %334 = vrot.lane.b32.xlu0 %v332_v31, %s1916_s18  ;;  %s3924_s8 = sld [smem:[#allocation65_spill]] }
  0xf3   : > { %3863 = vst [vmem:[#allocation100_spill] sm:$0xff] %v2767_v34  ;;  %v2781_v7 = vmul.f32 %v3867_v60, %v868_v62  ;;  %v3869_v34 = vmov %v3867_v60  ;;  %v2793_v21 = vsel %vm222_vm1, %v875_v3, 0.0  ;;  %v327_v1 = vadd.f32 %v325_v18, %v321_v35 }
  0xf4   : > { %3865 = vst [vmem:[#allocation101_spill] sm:$0xff] %v2771_v5  ;;  %v2785_v59 = vmul.f32 %v3869_v34, %v866_v25  ;;  %v3871_v5 = vstv %s3854_s13  ;;  %v3876_v34 = vstv %s2171_s1  ;;  %v3885_v18 = vstv %s3866_s30  ;;  %s3897_s1 = sld [smem:[#allocation68_spill]]  ;;  %s3929_s30 = sld [smem:[#allocation67_spill]] }
  0xf5   : > { %3868 = vst [vmem:[#allocation102_spill] sm:$0xff] %v2781_v7  ;;  %v2789_v42 = vmul.f32 %v3871_v5, %v868_v62  ;;  %v3873_v63 = vmov %v3871_v5  ;;  %v2803_v23 = vmul.f32 %v3876_v34, %v2775_v52  ;;  %v3878_v5 = vstv %s2173_s25  ;;  %s3900_s25 = sld [smem:[#allocation55_spill]]  ;;  %s3927_s13 = sld [smem:[#allocation60_spill]] }
  0xf6   : > { %3870 = vst [vmem:[#allocation103_spill] sm:$0xff] %v2785_v59  ;;  %v2797_v43 = vmul.f32 %v3873_v63, %v866_v25  ;;  %v2808_v62 = vmul.f32 %v3878_v5, %v2775_v52  ;;  %v3880_v3 = vmov %v3876_v34  ;;  %v3882_v25 = vstv %s3778_s16  ;;  %s3902_s16 = sld [smem:[#allocation64_spill]] }
  0xf7   : > { %3872 = vst [vmem:[#allocation104_spill] sm:$0xff] %v2789_v42  ;;  %3877 = vst [vmem:[#allocation106_spill] sm:$0xff] %v2803_v23  ;;  %v2813_v60 = vmul.f32 %v3880_v3, %v2793_v21  ;;  %v2818_v63 = vmul.f32 %v3882_v25, %v2775_v52  ;;  %v1152_v31 = vmul.f32 %v3885_v18, %v2793_v21  ;;  %v3887_v35 = vmov %v3885_v18 }
  0xf8   : > { %3874 = vst [vmem:[#allocation105_spill] sm:$0xff] %v2797_v43  ;;  %3879 = vst [vmem:[#allocation107_spill] sm:$0xff] %v2808_v62  ;;  %v1153_v34 = vmul.f32 %v3887_v35, %v2775_v52  ;;  %v333_v43 = vadd.f32 %v331_v15, %v327_v1  ;;  %v2829_v42 = vmul.f32 %v3878_v5, %v2793_v21  ;;  %v3889_v3 = vmov %v3882_v25  ;;  %v879_v62 = vpop.permute.xlu0 %878 }
  0xf9   : > { %3884 = vst [vmem:[#allocation108_spill] sm:$0xff] %v2818_v63  ;;  %v2834_v59 = vmul.f32 %v3889_v3, %v2793_v21  ;;  %v3891_v25 = vstv %s2183_s0  ;;  %v1154_v18 = vadd.f32 %v1152_v31, %v1146_v24  ;;  %v3895_v35 = vstv %s3875_s29  ;;  %s3901_s0 = sld [smem:[#allocation63_spill]]  ;;  %s3931_s29 = sld [smem:[#allocation70_spill]] }
  0xfa   : > { %3888 = vst [vmem:[#allocation109_spill] sm:$0xff] %v2829_v42  ;;  %v2839_v7 = vmul.f32 %v3891_v25, %v2793_v21  ;;  %v1155_v63 = vadd.f32 %v1153_v34, %v1147_v11  ;;  %v3893_v15 = vmov %v3891_v25  ;;  %v379_v5 = vmul.f32 %v3895_v35, %v2624_v33  ;;  %336 = vrot.lane.b32.xlu1 %v333_v43, %s1916_s18 }
  0xfb   : > { %3890 = vst [vmem:[#allocation110_spill] sm:$0xff] %v2834_v59  ;;  %v2844_v1 = vmul.f32 %v3893_v15, %v2775_v52  ;;  %v3896_v3 = vstv %s3881_s12  ;;  %v3898_v25 = vstv %s3883_s26  ;;  %v3899_v11 = vstv %s3886_s22  ;;  %s1917_s12 = smov 2   ;;  %s3941_s26 = sld [smem:[#allocation69_spill]] }
  0xfc   : > { %3892 = vst [vmem:[#allocation111_spill] sm:$0xff] %v2839_v7  ;;  %v401_v59 = vmul.f32 %v3896_v3, %v2614_v50  ;;  %v407_v24 = vmul.f32 %v3898_v25, %v2647_v38  ;;  %v413_v31 = vmul.f32 %v3899_v11, %v2686_v28  ;;  %v376_v34 = vadd.f32 %v2516_v12, %v2586_v26  ;;  %s1918_s22 = smov 1  }
  0xfd   : > { %3894 = vst [vmem:[#allocation112_spill] sm:$0xff] %v2844_v1  ;;  %v381_v15 = vadd.f32 %v379_v5, %v375_v53  ;;  %v3903_v43 = vmov %v3895_v35  ;;  %v3904_v1 = vmov %v3896_v3  ;;  %v3905_v7 = vmov %v3898_v25 }
  0xfe   : > { %v380_v35 = vmul.f32 %v3903_v43, %v2608_v47  ;;  %v402_v3 = vmul.f32 %v3904_v1, %v2631_v58  ;;  %v408_v51 = vmul.f32 %v3905_v7, %v2653_v48  ;;  %v3906_v25 = vmov %v3899_v11 }
  0xff   : > { %v414_v42 = vmul.f32 %v3906_v25, %v2693_v44  ;;  %v2875_v11 = vsel %vm232_vm4, %v879_v62, %v881_v2  ;;  %v883_v12 = vsel %vm232_vm4, %v881_v2, %v879_v62  ;;  %v458_v26 = vadd.f32 %v2535_v6, %v2590_v0 }
 0x100   : > { %3908 = vst [vmem:[#allocation113_spill] sm:$0xff] %v2875_v11  ;;  %v3909_v53 = vrot.slane %v2255_v49, %v2082_v8  ;;  %v382_v7 = vadd.f32 %v380_v35, %v376_v34  ;;  %v2886_v5 = vsel %vm235_vm6, %v883_v12, 0.0  ;;  %v3911_v43 = vstv %s3897_s1  ;;  %s3943_s1 = sld [smem:[#allocation71_spill]] }
 0x101   : > { %3910 = vst [vmem:[#allocation114_spill] sm:$0xff] %v2886_v5  ;;  %v1159_v25 = vmul.f32 %v3911_v43, %v2875_v11  ;;  %v3912_v36 = vmov %v3911_v43  ;;  %v3913_v2 = vstv %s3900_s25  ;;  %v3914_v6 = vstv %s3901_s0 }
 0x102   : > { %v397_v1 = vadd.f32 %v3909_v53, %v381_v15  ;;  %v1158_v10 = vmul.f32 %v3912_v36, %v2886_v5  ;;  %v462_v62 = vmul.f32 %v3913_v2, %v2624_v33  ;;  %v484_v0 = vmul.f32 %v3914_v6, %v2614_v50 }
 0x103   : > { %v3915_v15 = vstv %s3902_s16  ;;  %v3916_v12 = vrot.slane %v2255_v49, %v2085_v9  ;;  %v1161_v43 = vadd.f32 %v1159_v25, %v1155_v63  ;;  %v3917_v36 = vstv %s3907_s11  ;;  %s3964_s11 = sld [smem:[#allocation61_spill]] }
 0x104   : > { %v490_v34 = vmul.f32 %v3915_v15, %v2647_v38  ;;  %v403_v35 = vadd.f32 %v401_v59, %v397_v1  ;;  %v496_v11 = vmul.f32 %v3917_v36, %v2686_v28  ;;  %v1160_v23 = vadd.f32 %v1158_v10, %v1154_v18  ;;  %v889_v15 = vpop.permute.xlu1 %888  ;;  %v887_v59 = vpop.permute.xlu0 %886 }
 0x105   : > { %v398_v53 = vadd.f32 %v3916_v12, %v382_v7  ;;  %v464_v2 = vadd.f32 %v462_v62, %v458_v26  ;;  %v459_v40 = vadd.f32 %v2520_v45, %v2595_v27  ;;  %v3918_v6 = vstv %s3900_s25  ;;  %s3944_s25 = sld [smem:[#allocation74_spill]] }
 0x106   : > { %v463_v5 = vmul.f32 %v3918_v6, %v2608_v47  ;;  %v409_v1 = vadd.f32 %v407_v24, %v403_v35  ;;  %v3920_v7 = vrot.slane %v2328_v61, %v2085_v9  ;;  %v3921_v25 = vstv %s3901_s0  ;;  %s3958_s0 = sld [smem:[#allocation75_spill]] }
 0x107   : > { %v404_v49 = vadd.f32 %v402_v3, %v398_v53  ;;  %v485_v12 = vmul.f32 %v3921_v25, %v2631_v58  ;;  %v3922_v10 = vrot.slane %v2275_v57, %v2082_v8  ;;  %v3923_v27 = vstv %s3902_s16  ;;  %s3960_s16 = sld [smem:[#allocation58_spill]] }
 0x108   : > { %v1177_v63 = vadd.f32 %v3920_v7, %v1161_v43  ;;  %v465_v45 = vadd.f32 %v463_v5, %v459_v40  ;;  %v491_v26 = vmul.f32 %v3923_v27, %v2653_v48  ;;  %v3925_v62 = vmov %v3917_v36  ;;  %v895_v27 = vpop.permute.xlu0 %894 }
 0x109   : > { %v480_v18 = vadd.f32 %v3922_v10, %v464_v2  ;;  %v497_v24 = vmul.f32 %v3925_v62, %v2693_v44  ;;  %v415_v3 = vadd.f32 %v413_v31, %v409_v1  ;;  %v410_v35 = vadd.f32 %v408_v51, %v404_v49 }
 0x10a   : > { %v3926_v53 = vrot.slane %v2328_v61, %v2082_v8  ;;  %v2934_v36 = vsel %vm245_vm5, %v887_v59, %v889_v15  ;;  %v3928_v5 = vrot.slane %v2275_v57, %v2085_v9  ;;  %v891_v31 = vsel %vm245_vm5, %v889_v15, %v887_v59 }
 0x10b   : > { %v486_v40 = vadd.f32 %v484_v0, %v480_v18  ;;  %v3930_v51 = vstv %s3919_s5  ;;  %417 = vrot.lane.b32.xlu0 %v415_v3, %s1917_s12  ;;  %v416_v61 = vadd.f32 %v414_v42, %v410_v35  ;;  %v612_v57 = vadd.f32 %v2543_v19, %v2599_v46  ;;  %s3966_s5 = sld [smem:[#allocation76_spill]] }
 0x10c   : > { %v1176_v43 = vadd.f32 %v3926_v53, %v1160_v23  ;;  %v481_v2 = vadd.f32 %v3928_v5, %v465_v45  ;;  %v1180_v6 = vmul.f32 %v3930_v51, %v2934_v36  ;;  %v2947_v23 = vsel %vm251_vm7, %v891_v31, 0.0  ;;  %v897_v45 = vpop.permute.xlu1 %896 }
 0x10d   : > { %v3932_v0 = vstv %s3924_s8  ;;  %v492_v15 = vadd.f32 %v490_v34, %v486_v40  ;;  %v3933_v49 = vmov %v3930_v51  ;;  %v3934_v42 = vstv %s3927_s13  ;;  %419 = vrot.lane.b32.xlu1 %v416_v61, %s1917_s12  ;;  %s3983_s8 = sld [smem:[#allocation78_spill]] }
 0x10e   : > { %v616_v1 = vmul.f32 %v3932_v0, %v2624_v33  ;;  %v487_v59 = vadd.f32 %v485_v12, %v481_v2  ;;  %v1181_v7 = vmul.f32 %v3933_v49, %v2947_v23  ;;  %v1182_v25 = vadd.f32 %v1180_v6, %v1176_v43 }
 0x10f   : > { %v2960_v10 = vmul.f32 %v3934_v42, %v2793_v21  ;;  %v3935_v46 = vstv %s3929_s30  ;;  %v3936_v34 = vstv %s3931_s29  ;;  %v498_v62 = vadd.f32 %v496_v11, %v492_v15  ;;  %s4093_s30 = sld [smem:[#allocation22_spill]]  ;;  %s4094_s29 = sld [smem:[#allocation20_spill]] }
 0x110   : > { %v618_v18 = vadd.f32 %v616_v1, %v612_v57  ;;  %v638_v19 = vmul.f32 %v3935_v46, %v2614_v50  ;;  %v644_v12 = vmul.f32 %v3936_v34, %v2647_v38  ;;  %v493_v3 = vadd.f32 %v491_v26, %v487_v59 }
 0x111   : > { %v1183_v35 = vadd.f32 %v1181_v7, %v1177_v63  ;;  %v3937_v53 = vstv %s2257_s9  ;;  %v3938_v40 = vrot.slane %v2312_v14, %v2082_v8  ;;  %v613_v2 = vadd.f32 %v2547_v20, %v2604_v30  ;;  %500 = vrot.lane.b32.xlu0 %v498_v62, %s1918_s22  ;;  %s1919_s9 = smov 127  }
 0x112   : > { %v650_v43 = vmul.f32 %v3937_v53, %v2686_v28  ;;  %v3939_v31 = vmov %v3932_v0  ;;  %v3940_v11 = vmov %v3935_v46  ;;  %v499_v63 = vadd.f32 %v497_v24, %v493_v3 }
 0x113   : > { %v634_v5 = vadd.f32 %v3938_v40, %v618_v18  ;;  %v617_v51 = vmul.f32 %v3939_v31, %v2608_v47  ;;  %v639_v26 = vmul.f32 %v3940_v11, %v2631_v58  ;;  %v3942_v6 = vmov %v3936_v34  ;;  %v905_v40 = vpop.permute.xlu1 %904 }
 0x114   : > { %v645_v61 = vmul.f32 %v3942_v6, %v2653_v48  ;;  %v2989_v57 = vsel %vm260_vm8, %v895_v27, %v897_v45  ;;  %v899_v20 = vsel %vm260_vm8, %v897_v45, %v895_v27  ;;  %v3945_v24 = vstv %s2295_s24  ;;  %502 = vrot.lane.b32.xlu1 %v499_v63, %s1918_s22  ;;  %s3953_s24 = sld [smem:[#allocation73_spill]] }
 0x115   : > { %v640_v30 = vadd.f32 %v638_v19, %v634_v5  ;;  %v619_v0 = vadd.f32 %v617_v51, %v613_v2  ;;  %v2995_v1 = vsel %vm264_vm9, %v899_v20, 0.0  ;;  %v1186_v15 = vmul.f32 %v3945_v24, %v2989_v57  ;;  %v903_v5 = vpop.permute.xlu0 %902 }
 0x116   : > { %v3946_v59 = vmov %v3937_v53  ;;  %v3947_v7 = vmov %v3945_v24  ;;  %v695_v18 = vadd.f32 %v2553_v56, %v2620_v17  ;;  %v3948_v46 = vstv %s3941_s26 }
 0x117   : > { %v651_v49 = vmul.f32 %v3946_v59, %v2693_v44  ;;  %v1187_v42 = vmul.f32 %v3947_v7, %v2995_v1  ;;  %v699_v19 = vmul.f32 %v3948_v46, %v2624_v33  ;;  %v646_v34 = vadd.f32 %v644_v12, %v640_v30 }
 0x118   : > { %v3949_v45 = vrot.slane %v2312_v14, %v2085_v9  ;;  %v1188_v62 = vadd.f32 %v1186_v15, %v1182_v25  ;;  %v3950_v3 = vstv %s3943_s1  ;;  %v3951_v56 = vstv %s3944_s25 }
 0x119   : > { %v721_v53 = vmul.f32 %v3950_v3, %v2614_v50  ;;  %v1189_v2 = vadd.f32 %v1187_v42, %v1183_v35  ;;  %v701_v31 = vadd.f32 %v699_v19, %v695_v18  ;;  %v727_v17 = vmul.f32 %v3951_v56, %v2647_v38 }
 0x11a   : > { %v635_v27 = vadd.f32 %v3949_v45, %v619_v0  ;;  %v3952_v51 = vstv %s2285_s10  ;;  %v652_v11 = vadd.f32 %v650_v43, %v646_v34  ;;  %v696_v14 = vadd.f32 %v2557_v55, %v2661_v39  ;;  %s1920_s10 = smov 126  }
 0x11b   : > { %v733_v12 = vmul.f32 %v3952_v51, %v2686_v28  ;;  %v3954_v25 = vmov %v3948_v46  ;;  %v3955_v35 = vrot.slane %v2331_v13, %v2082_v8  ;;  %v3956_v30 = vmov %v3950_v3 }
 0x11c   : > { %v641_v63 = vadd.f32 %v639_v26, %v635_v27  ;;  %v700_v6 = vmul.f32 %v3954_v25, %v2608_v47  ;;  %v722_v0 = vmul.f32 %v3956_v30, %v2631_v58  ;;  %v3957_v24 = vmov %v3951_v56  ;;  %654 = vrot.lane.b32.xlu0 %v652_v11, %s1919_s9 }
 0x11d   : > { %v717_v20 = vadd.f32 %v3955_v35, %v701_v31  ;;  %v728_v15 = vmul.f32 %v3957_v24, %v2653_v48  ;;  %v3040_v43 = vsel %vm273_vm10, %v903_v5, %v905_v40  ;;  %v907_v26 = vsel %vm273_vm10, %v905_v40, %v903_v5 }
 0x11e   : > { %v647_v55 = vadd.f32 %v645_v61, %v641_v63  ;;  %v702_v39 = vadd.f32 %v700_v6, %v696_v14  ;;  %v3959_v59 = vstv %s2303_s23  ;;  %v3050_v18 = vsel %vm277_vm11, %v907_v26, 0.0  ;;  %s3969_s23 = sld [smem:[#allocation77_spill]] }
 0x11f   : > { %v1192_v7 = vmul.f32 %v3959_v59, %v3040_v43  ;;  %v723_v42 = vadd.f32 %v721_v53, %v717_v20  ;;  %v778_v46 = vadd.f32 %v2561_v54, %v2700_v32  ;;  %v3961_v19 = vstv %s3953_s24  ;;  %s4096_s24 = sld [smem:[#allocation117_spill]] }
 0x120   : > { %v782_v61 = vmul.f32 %v3961_v19, %v2624_v33  ;;  %v653_v34 = vadd.f32 %v651_v49, %v647_v55  ;;  %v3962_v45 = vrot.slane %v2331_v13, %v2085_v9  ;;  %v3963_v3 = vmov %v3959_v59  ;;  %v3980_v59 = vld [vmem:[#allocation95_spill] sm:$0xff] }
 0x121   : > { %v1193_v53 = vmul.f32 %v3963_v3, %v3050_v18  ;;  %v3063_v29 = vadd.f32 %v1192_v7, %v1188_v62  ;;  %v3965_v40 = vstv %s3927_s13  ;;  %v729_v54 = vadd.f32 %v727_v17, %v723_v42  ;;  %v3981_v7 = vld [vmem:[#allocation106_spill] sm:$0xff]  ;;  %s4092_s13 = sld [smem:[#allocation15_spill]] }
 0x122   : > { %v718_v27 = vadd.f32 %v3962_v45, %v702_v39  ;;  %v3068_v5 = vmul.f32 %v3965_v40, %v2775_v52  ;;  %v784_v33 = vadd.f32 %v782_v61, %v778_v46  ;;  %v3967_v32 = vstv %s3958_s0  ;;  %656 = vrot.lane.b32.xlu1 %v653_v34, %s1919_s9  ;;  %v3984_v61 = vld [vmem:[#allocation113_spill] sm:$0xff] }
 0x123   : > { %v804_v49 = vmul.f32 %v3967_v32, %v2614_v50  ;;  %v3968_v31 = vmov %v3952_v51  ;;  %v3077_v62 = vadd.f32 %v1193_v53, %v1189_v2  ;;  %v3970_v51 = vstv %s3960_s16  ;;  %s1470_s16 = scalar_lea.sflag [#allocation6], %s4094_s29 }
 0x124   : > { %v724_v13 = vadd.f32 %v722_v0, %v718_v27  ;;  %v734_v56 = vmul.f32 %v3968_v31, %v2693_v44  ;;  %v810_v11 = vmul.f32 %v3970_v51, %v2647_v38  ;;  %v735_v63 = vadd.f32 %v733_v12, %v729_v54 }
 0x125   : > { %v3971_v17 = vrot.slane %v2360_v37, %v2082_v8  ;;  %v779_v50 = vadd.f32 %v2565_v22, %v2708_v4  ;;  %v3972_v25 = vmov %v3961_v19  ;;  %v3973_v35 = vstv %s3964_s11 }
 0x126   : > { %v783_v6 = vmul.f32 %v3972_v25, %v2608_v47  ;;  %v3093_v2 = vmul.f32 %v3973_v35, %v2793_v21  ;;  %v730_v20 = vadd.f32 %v728_v15, %v724_v13  ;;  %v3974_v38 = vstv %s3966_s5  ;;  %737 = vrot.lane.b32.xlu0 %v735_v63, %s1920_s10  ;;  %v3976_v21 = vld [vmem:[#allocation114_spill] sm:$0xff]  ;;  %v3990_v13 = vld [vmem:[#allocation80_spill] sm:$0xff]  ;;  %s1922_s5 = smov [#allocation7]  }
 0x127   : > { %v800_v14 = vadd.f32 %v3971_v17, %v784_v33  ;;  %v816_v12 = vmul.f32 %v3974_v38, %v2686_v28  ;;  %v3975_v30 = vmov %v3967_v32  ;;  %v920_v4 = vadd.f32 %v2813_v60, %v2747_v41  ;;  %s1684_s26 = sshll.u32 %s4092_s13, 7 }
 0x128   : > { %v805_v0 = vmul.f32 %v3975_v30, %v2631_v58  ;;  %v785_v47 = vadd.f32 %v783_v6, %v779_v50  ;;  %v3977_v24 = vstv %s3969_s23  ;;  %v736_v55 = vadd.f32 %v734_v56, %v730_v20  ;;  %v3995_v50 = vld [vmem:[#allocation109_spill] sm:$0xff]  ;;  %s3495_s0 = scalar_lea.hbm %s4096_s24, %s1684_s26  ;;  %s1817_s23 = sshll.u32 %s1922_s5, 4  ;;  %s1818_s23 = int_to_ptr.vmem [resolvable:$false] %s1817_s23 }
 0x129   : > { %v806_v22 = vadd.f32 %v804_v49, %v800_v14  ;;  %v924_v15 = vmul.f32 %v3977_v24, %v3976_v21  ;;  %v3978_v28 = vmov %v3970_v51  ;;  %v3979_v58 = vstv %s2322_s20  ;;  %v3994_v14 = vld [vmem:[#allocation97_spill] sm:$0xff]  ;;  %s1921_s20 = smov 125  }
 0x12a   : > { %v811_v39 = vmul.f32 %v3978_v28, %v2653_v48  ;;  %v946_v26 = vmul.f32 %v3979_v58, %v2934_v36  ;;  %v921_v42 = vadd.f32 %v3981_v7, %v3980_v59  ;;  %v3982_v19 = vrot.slane %v2360_v37, %v2085_v9  ;;  %739 = vrot.lane.b32.xlu1 %v736_v55, %s1920_s10  ;;  %v4001_v55 = vld [vmem:[#allocation107_spill] sm:$0xff] }
 0x12b   : > { %v812_v46 = vadd.f32 %v810_v11, %v806_v22  ;;  %v926_v60 = vadd.f32 %v924_v15, %v920_v4  ;;  %v3985_v34 = vmov %v3977_v24  ;;  %v3986_v48 = vmov %v3974_v38  ;;  %v4000_v15 = vld [vmem:[#allocation96_spill] sm:$0xff] }
 0x12c   : > { %v801_v41 = vadd.f32 %v3982_v19, %v785_v47  ;;  %v925_v45 = vmul.f32 %v3985_v34, %v3984_v61  ;;  %v817_v27 = vmul.f32 %v3986_v48, %v2693_v44  ;;  %v3987_v3 = vstv %s2324_s6  ;;  %v4004_v19 = vld [vmem:[#allocation83_spill] sm:$0xff]  ;;  %v4007_v48 = vld [vmem:[#allocation110_spill] sm:$0xff]  ;;  %s4026_s6 = sld [smem:[#allocation85_spill]] }
 0x12d   : > { %v952_v53 = vmul.f32 %v3987_v3, %v2989_v57  ;;  %v3988_v40 = vstv %s2334_s7  ;;  %v3989_v37 = vmov %v3979_v58  ;;  %v818_v32 = vadd.f32 %v816_v12, %v812_v46 }
 0x12e   : > { %v958_v54 = vmul.f32 %v3988_v40, %v3040_v43  ;;  %v947_v33 = vmul.f32 %v3989_v37, %v2947_v23  ;;  %v807_v49 = vadd.f32 %v805_v0, %v801_v41  ;;  %v3991_v31 = vrot.slane %v3990_v13, %v2082_v8 }
 0x12f   : > { %v927_v51 = vadd.f32 %v925_v45, %v921_v42  ;;  %v3992_v44 = vmov %v3987_v3  ;;  %v3993_v63 = vmov %v3988_v40  ;;  %v998_v25 = vadd.f32 %v3995_v50, %v3994_v14  ;;  %820 = vrot.lane.b32.xlu0 %v818_v32, %s1921_s20  ;;  %v4006_v45 = vld [vmem:[#allocation98_spill] sm:$0xff] }
 0x130   : > { %v942_v56 = vadd.f32 %v3991_v31, %v926_v60  ;;  %v953_v11 = vmul.f32 %v3992_v44, %v2995_v1  ;;  %v959_v17 = vmul.f32 %v3993_v63, %v3050_v18  ;;  %v3996_v6 = vstv %s3983_s8 }
 0x131   : > { %v1002_v35 = vmul.f32 %v3996_v6, %v3976_v21  ;;  %v813_v20 = vadd.f32 %v811_v39, %v807_v49  ;;  %v3997_v12 = vrot.slane %v3990_v13, %v2085_v9  ;;  %v3998_v0 = vstv %s2353_s27  ;;  %s4078_s27 = sld [smem:[#allocation115_spill]] }
 0x132   : > { %v948_v38 = vadd.f32 %v946_v26, %v942_v56  ;;  %v1024_v22 = vmul.f32 %v3998_v0, %v2934_v36  ;;  %v3999_v4 = vstv %s2355_s4  ;;  %v999_v28 = vadd.f32 %v4001_v55, %v4000_v15  ;;  %s4060_s4 = sld [smem:[#allocation90_spill]] }
 0x133   : > { %v943_v30 = vadd.f32 %v3997_v12, %v927_v51  ;;  %v1004_v47 = vadd.f32 %v1002_v35, %v998_v25  ;;  %v1030_v24 = vmul.f32 %v3999_v4, %v2989_v57  ;;  %v4002_v58 = vmov %v3996_v6  ;;  %v4014_v25 = vld [vmem:[#allocation99_spill] sm:$0xff]  ;;  %v4015_v6 = vld [vmem:[#allocation108_spill] sm:$0xff] }
 0x134   : > { %v1003_v39 = vmul.f32 %v4002_v58, %v3984_v61  ;;  %v819_v26 = vadd.f32 %v817_v27, %v813_v20  ;;  %v954_v59 = vadd.f32 %v952_v53, %v948_v38  ;;  %v4003_v42 = vmov %v3998_v0  ;;  %v4017_v0 = vld [vmem:[#allocation87_spill] sm:$0xff]  ;;  %v4021_v58 = vld [vmem:[#allocation100_spill] sm:$0xff] }
 0x135   : > { %v949_v7 = vadd.f32 %v947_v33, %v943_v30  ;;  %v1025_v46 = vmul.f32 %v4003_v42, %v2947_v23  ;;  %v4005_v41 = vrot.slane %v4004_v19, %v2082_v8  ;;  %v1076_v3 = vadd.f32 %v4007_v48, %v4006_v45 }
 0x136   : > { %v1005_v34 = vadd.f32 %v1003_v39, %v999_v28  ;;  %v4008_v40 = vstv %s2374_s28  ;;  %822 = vrot.lane.b32.xlu1 %v819_v26, %s1921_s20  ;;  %v960_v27 = vadd.f32 %v958_v54, %v954_v59  ;;  %v4009_v33 = vstv %s2363_s17  ;;  %v4022_v39 = vld [vmem:[#allocation111_spill] sm:$0xff]  ;;  %s4029_s17 = sld [smem:[#allocation79_spill]]  ;;  %s4052_s28 = sld [smem:[#allocation84_spill]] }
 0x137   : > { %v1020_v60 = vadd.f32 %v4005_v41, %v1004_v47  ;;  %v1080_v37 = vmul.f32 %v4008_v40, %v3976_v21  ;;  %v955_v53 = vadd.f32 %v953_v11, %v949_v7  ;;  %v1036_v32 = vmul.f32 %v4009_v33, %v3040_v43 }
 0x138   : > { %v4010_v49 = vmov %v3999_v4  ;;  %v4011_v56 = vrot.slane %v4004_v19, %v2085_v9  ;;  %v4012_v63 = vstv %s2393_s19  ;;  %962 = vrot.lane.b32.xlu0 %v960_v27, %s1916_s18  ;;  %v4013_v11 = vmov %v4009_v33  ;;  %v4030_v33 = vld [vmem:[#allocation101_spill] sm:$0xff]  ;;  %s3250_s19 = sld [smem:[#allocation3 + $0x61]] }
 0x139   : > { %v1031_v13 = vmul.f32 %v4010_v49, %v2995_v1  ;;  %v1026_v31 = vadd.f32 %v1024_v22, %v1020_v60  ;;  %v1082_v44 = vadd.f32 %v1080_v37, %v1076_v3  ;;  %v1102_v14 = vmul.f32 %v4012_v63, %v2934_v36 }
 0x13a   : > { %v1021_v51 = vadd.f32 %v4011_v56, %v1005_v34  ;;  %v961_v54 = vadd.f32 %v959_v17, %v955_v53  ;;  %v1037_v50 = vmul.f32 %v4013_v11, %v3050_v18  ;;  %v1077_v35 = vadd.f32 %v4015_v6, %v4014_v25 }
 0x13b   : > { %v4016_v20 = vmov %v4008_v40  ;;  %v1032_v12 = vadd.f32 %v1030_v24, %v1026_v31  ;;  %v4018_v22 = vrot.slane %v4017_v0, %v2082_v8  ;;  %v4019_v17 = vstv %s2395_s3  ;;  %s4036_s3 = sld [smem:[#allocation81_spill]] }
 0x13c   : > { %v1081_v38 = vmul.f32 %v4016_v20, %v3984_v61  ;;  %v1027_v30 = vadd.f32 %v1025_v46, %v1021_v51  ;;  %v1108_v4 = vmul.f32 %v4019_v17, %v2989_v57  ;;  %964 = vrot.lane.b32.xlu1 %v961_v54, %s1916_s18  ;;  %v4020_v55 = vmov %v4012_v63  ;;  %v4034_v63 = vld [vmem:[#allocation88_spill] sm:$0xff]  ;;  %s4091_s18 = sld [smem:[#allocation21_spill]] }
 0x13d   : > { %v1098_v47 = vadd.f32 %v4018_v22, %v1082_v44  ;;  %v1103_v28 = vmul.f32 %v4020_v55, %v2947_v23  ;;  %v1225_v26 = vadd.f32 %v4022_v39, %v4021_v58  ;;  %v4023_v24 = vstv %s2383_s21  ;;  %v4040_v22 = vld [vmem:[#allocation102_spill] sm:$0xff]  ;;  %s4048_s21 = sld [smem:[#allocation82_spill]] }
 0x13e   : > { %v1083_v15 = vadd.f32 %v1081_v38, %v1077_v35  ;;  %v1229_v59 = vmul.f32 %v4023_v24, %v3976_v21  ;;  %v1038_v7 = vadd.f32 %v1036_v32, %v1032_v12  ;;  %v1033_v42 = vadd.f32 %v1031_v13, %v1027_v30  ;;  %v4031_v32 = vld [vmem:[#allocation112_spill] sm:$0xff] }
 0x13f   : > { %v1104_v46 = vadd.f32 %v1102_v14, %v1098_v47  ;;  %v4024_v19 = vstv %s2403_s15  ;;  %v4025_v60 = vrot.slane %v4017_v0, %v2085_v9  ;;  %v4027_v45 = vmov %v4019_v17  ;;  %s4041_s15 = sld [smem:[#allocation86_spill]] }
 0x140   : > { %v1114_v41 = vmul.f32 %v4024_v19, %v3040_v43  ;;  %v1109_v48 = vmul.f32 %v4027_v45, %v2995_v1  ;;  %v1231_v3 = vadd.f32 %v1229_v59, %v1225_v26  ;;  %v4028_v40 = vstv %s2405_s2  ;;  %1040 = vrot.lane.b32.xlu0 %v1038_v7, %s1917_s12  ;;  %s4047_s2 = sld [smem:[#allocation89_spill]] }
 0x141   : > { %v1099_v34 = vadd.f32 %v4025_v60, %v1083_v15  ;;  %v1251_v37 = vmul.f32 %v4028_v40, %v2934_v36  ;;  %v1039_v27 = vadd.f32 %v1037_v50, %v1033_v42  ;;  %v1110_v53 = vadd.f32 %v1108_v4, %v1104_v46 }
 0x142   : > { %v1226_v49 = vadd.f32 %v4031_v32, %v4030_v33  ;;  %v4032_v13 = vmov %v4023_v24  ;;  %v4033_v51 = vmov %v4024_v19  ;;  %v4035_v14 = vrot.slane %v4034_v63, %v2082_v8  ;;  %v4046_v24 = vld [vmem:[#allocation103_spill] sm:$0xff] }
 0x143   : > { %v1230_v31 = vmul.f32 %v4032_v13, %v3984_v61  ;;  %v1105_v56 = vadd.f32 %v1103_v28, %v1099_v34  ;;  %v1115_v44 = vmul.f32 %v4033_v51, %v3050_v18  ;;  %v4037_v11 = vstv %s2424_s14  ;;  %1042 = vrot.lane.b32.xlu1 %v1039_v27, %s1917_s12  ;;  %s4095_s12 = sld [smem:[#allocation18_spill]] }
 0x144   : > { %v1247_v54 = vadd.f32 %v4035_v14, %v1231_v3  ;;  %v1257_v50 = vmul.f32 %v4037_v11, %v2989_v57  ;;  %v1116_v25 = vadd.f32 %v1114_v41, %v1110_v53  ;;  %v4038_v6 = vstv %s4026_s6 }
 0x145   : > { %v1263_v35 = vmul.f32 %v4038_v6, %v3040_v43  ;;  %v1232_v20 = vadd.f32 %v1230_v31, %v1226_v49  ;;  %v4039_v38 = vmov %v4028_v40  ;;  %v1111_v30 = vadd.f32 %v1109_v48, %v1105_v56  ;;  %v4058_v56 = vld [vmem:[#allocation104_spill] sm:$0xff] }
 0x146   : > { %v1252_v12 = vmul.f32 %v4039_v38, %v2947_v23  ;;  %v1253_v0 = vadd.f32 %v1251_v37, %v1247_v54  ;;  %v1303_v47 = vadd.f32 %v2960_v10, %v4040_v22  ;;  %v4042_v17 = vstv %s4029_s17  ;;  %1118 = vrot.lane.b32.xlu0 %v1116_v25, %s1918_s22  ;;  %v4054_v37 = vld [vmem:[#allocation91_spill] sm:$0xff]  ;;  %v4064_v38 = vld [vmem:[#allocation105_spill] sm:$0xff] }
 0x147   : > { %v1307_v4 = vmul.f32 %v4042_v17, %v3976_v21  ;;  %v4043_v15 = vrot.slane %v4034_v63, %v2085_v9  ;;  %v4044_v28 = vmov %v4037_v11  ;;  %v4045_v39 = vstv %s4036_s3 }
 0x148   : > { %v1258_v58 = vmul.f32 %v4044_v28, %v2995_v1  ;;  %v1329_v26 = vmul.f32 %v4045_v39, %v2934_v36  ;;  %v1304_v10 = vadd.f32 %v3068_v5, %v4046_v24  ;;  %v1117_v59 = vadd.f32 %v1115_v44, %v1111_v30 }
 0x149   : > { %v1248_v55 = vadd.f32 %v4043_v15, %v1232_v20  ;;  %v1259_v7 = vadd.f32 %v1257_v50, %v1253_v0  ;;  %v1309_v42 = vadd.f32 %v1307_v4, %v1303_v47  ;;  %v4049_v46 = vmov %v4042_v17  ;;  %v4067_v15 = vld [vmem:[#allocation92_spill] sm:$0xff]  ;;  %p4098_p1 = scmp.ne.s32.totalorder %s4095_s12, 0 }
 0x14a   : > { %v1308_v19 = vmul.f32 %v4049_v46, %v3984_v61  ;;  %v4050_v41 = vstv %s3964_s11  ;;  %v4051_v45 = vmov %v4038_v6  ;;  %v4053_v3 = vstv %s4041_s15  ;;  %1120 = vrot.lane.b32.xlu1 %v1117_v59, %s1918_s22  ;;  %s1484_s22 = sshll.u32 %s4093_s30, 4  ;;  %s3497_s22 = int_to_ptr.vmem [resolvable:$true] %s1484_s22 }
 0x14b   : > { %v1380_v60 = vmul.f32 %v4050_v41, %v2775_v52  ;;  %v1254_v34 = vadd.f32 %v1252_v12, %v1248_v55  ;;  %v1264_v48 = vmul.f32 %v4051_v45, %v3050_v18  ;;  %v1335_v40 = vmul.f32 %v4053_v3, %v2989_v57  ;;  %s1813_s11 = scalar_lea.vmem %s3497_s22, 128  ;;  %p1820_p13 = scmp.lt.s32.totalorder %s3497_s22, %s1818_s23 }
 0x14c   : > { %v1265_v5 = vadd.f32 %v1263_v35, %v1259_v7  ;;  %v4055_v27 = vrot.slane %v4054_v37, %v2082_v8  ;;  %v1310_v33 = vadd.f32 %v1308_v19, %v1304_v10  ;;  %v4056_v52 = vmov %v4045_v39  ;;  %p1814_p0 = scmp.ne.s32.totalorder %s3497_s22, %s1813_s11 }
 0x14d   : > { %v1330_v32 = vmul.f32 %v4056_v52, %v2947_v23  ;;  %v1260_v49 = vadd.f32 %v1258_v58, %v1254_v34  ;;  %v4057_v13 = vstv %s4047_s2  ;;  %v1381_v51 = vadd.f32 %v3093_v2, %v4058_v56  ;;  %v4074_v34 = vld [vmem:[#allocation56_spill] sm:$0xff] }
 0x14e   : > { %v1325_v53 = vadd.f32 %v4055_v27, %v1309_v42  ;;  %v1341_v31 = vmul.f32 %v4057_v13, %v3040_v43  ;;  %v4059_v44 = vstv %s4048_s21  ;;  %1267 = vrot.lane.b32.xlu0 %v1265_v5, %s1919_s9  ;;  %v4061_v54 = vrot.slane %v4054_v37, %v2085_v9  ;;  %v4077_v5 = vld [vmem:[#allocation94_spill] sm:$0xff]  ;;  %p1815_p2 = pnand %p1814_p0, %p4098_p1 }
 0x14f   : > { %v1385_v63 = vmul.f32 %v4059_v44, %v3976_v21  ;;  %v4062_v50 = vmov %v4053_v3  ;;  %v4063_v6 = vstv %s4052_s28  ;;  %v1266_v20 = vadd.f32 %v1264_v48, %v1260_v49 }
 0x150   : > { %v1331_v14 = vadd.f32 %v1329_v26, %v1325_v53  ;;  %v1326_v11 = vadd.f32 %v4061_v54, %v1310_v33  ;;  %v1336_v25 = vmul.f32 %v4062_v50, %v2995_v1  ;;  %v1407_v35 = vmul.f32 %v4063_v6, %v2934_v36  ;;  %p1816_p10 = pneg %p1815_p2 }
 0x151   : > { %v1387_v2 = vadd.f32 %v1385_v63, %v1381_v51  ;;  %v1382_v12 = vadd.f32 %v1380_v60, %v4064_v38  ;;  %v4065_v21 = vmov %v4059_v44  ;;  %v4066_v47 = vmov %v4057_v13  ;;  %1269 = vrot.lane.b32.xlu1 %v1266_v20, %s1919_s9  ;;  %v4073_v60 = vld [vmem:[#allocation23_spill] sm:$0xff]  ;;  %s4097_s9 = smov %s4096_s24 }
 0x152   : > { %v1386_v30 = vmul.f32 %v4065_v21, %v3984_v61  ;;  %v1337_v0 = vadd.f32 %v1335_v40, %v1331_v14  ;;  %v1332_v22 = vadd.f32 %v1330_v32, %v1326_v11  ;;  %v1342_v17 = vmul.f32 %v4066_v47, %v3050_v18 }
 0x153   : > { %v1418_v4 = vstv %s3250_s19  ;;  %v4068_v55 = vrot.slane %v4067_v15, %v2082_v8  ;;  %v4069_v28 = vstv %s4060_s4  ;;  %v4070_v26 = vmov %v4063_v6 }
 0x154   : > { %v1413_v58 = vmul.f32 %v4069_v28, %v2989_v57  ;;  %v1388_v39 = vadd.f32 %v1386_v30, %v1382_v12  ;;  %v1408_v24 = vmul.f32 %v4070_v26, %v2947_v23  ;;  %v1343_v61 = vadd.f32 %v1341_v31, %v1337_v0 }
 0x155   : > { %v1403_v36 = vadd.f32 %v4068_v55, %v1387_v2  ;;  %v1338_v10 = vadd.f32 %v1336_v25, %v1332_v22  ;;  %v1419_v7 = vmul.f32 %v1418_v4, %v3040_v43  ;;  %v4071_v42 = vrot.slane %v4067_v15, %v2085_v9  ;;  %v4076_v43 = vld [vmem:[#allocation93_spill] sm:$0xff] }
 0x156   : > { %v4072_v19 = vmov %v4069_v28  ;;  %v4075_v45 = vunpack.c.0.s8 %v4074_v34  ;;  %1345 = vrot.lane.b32.xlu0 %v1343_v61, %s1920_s10  ;;  %v1420_v40 = vmul.f32 %v1418_v4, %v3050_v18  ;;  %v585_v37 = vcombine.low %v4077_v5, %v4076_v43 }
 0x157   : > { %v1409_v59 = vadd.f32 %v1407_v35, %v1403_v36  ;;  %v1404_v46 = vadd.f32 %v4071_v42, %v1388_v39  ;;  %v1414_v41 = vmul.f32 %v4072_v19, %v2995_v1  ;;  %v1344_v23 = vadd.f32 %v1342_v17, %v1338_v10 }
 0x158   : > { %v3329_v57 = vsub.s32 %v4075_v45, %v4073_v60  ;;  %v1198_v32 = vcombine.low %v3063_v29, %v3077_v62  ;;  %v3355_v29 = vld [vmem:[%s4078_s27] sm:$0x3]  ;;  %vm504_vm0 = vcmp.lt.s32.totalorder %v2180_v16, 1  ;;  %vm658_vm8 = vcmp.lt.s32.totalorder %v2180_v16, 127 }
 0x159   : > { %v1415_v48 = vadd.f32 %v1413_v58, %v1409_v59  ;;  %v1410_v3 = vadd.f32 %v1408_v24, %v1404_v46  ;;  %1347 = vrot.lane.b32.xlu1 %v1344_v23, %s1920_s10  ;;  %v424_v44 = vadd.s32 4294967294, %v3355_v29  ;;  %v341_v54 = vadd.s32 4294967293, %v3355_v29  ;;  %s1819_s10 = scalar_lea.vmem %s1818_s23, 256 }
 0x15a   : > { %v592_v1 = vrot.slane %v585_v37, %v3329_v57  ;;  %v3343_v18 = vrot.slane %v1198_v32, %v3329_v57  ;;  %v507_v20 = vadd.s32 4294967295, %v3355_v29  ;;  %v661_v26 = vadd.s32 1, %v3355_v29  ;;  %p1821_p5 = scmp.lt.s32.totalorder %s1819_s10, %s1813_s11 }
 0x15b   : > { %v1421_v27 = vadd.f32 %v1419_v7, %v1415_v48  ;;  %v1416_v53 = vadd.f32 %v1414_v41, %v1410_v3  ;;  %vm425_vm14 = vcmp.ge.s32.totalorder %v424_v44, 0  ;;  %vm426_vm15 = vcmp.lt.s32.totalorder %v424_v44, 16 }
 0x15c   : > { %v599_v52 = vrot.slane %v592_v1, %v3329_v57  ;;  %v1212_v49 = vrot.slane %v3343_v18, %v3329_v57  ;;  %vm342_vm1 = vcmp.ge.s32.totalorder %v341_v54, 0  ;;  %vm343_vm2 = vcmp.lt.s32.totalorder %v341_v54, 16  ;;  %vm3368_vm3 = vmand %vm425_vm14, %vm426_vm15  ;;  %p1822_p7 = por %p1821_p5, %p1820_p13 }
 0x15d   : > { %1423 = vrot.lane.b32.xlu0 %v1421_v27, %s1921_s20  ;;  %v1422_v33 = vadd.f32 %v1420_v40, %v1416_v53  ;;  %vm508_vm4 = vcmp.ge.s32.totalorder %v507_v20, 0  ;;  %vm509_vm5 = vcmp.lt.s32.totalorder %v507_v20, 16  ;;  %vm3378_vm6 = vmand %vm342_vm1, %vm343_vm2  ;;  %vm662_vm9 = vcmp.ge.s32.totalorder %v661_v26, 0 }
 0x15e   : > { %vm3385_vm7 = vmand %vm508_vm4, %vm509_vm5  ;;  %vm663_vm10 = vcmp.lt.s32.totalorder %v661_v26, 16  ;;  %vm741_vm11 = vcmp.lt.s32.totalorder %v2180_v16, 126  ;;  %v744_v60 = vadd.s32 2, %v3355_v29  ;;  %vm824_vm4 = vcmp.lt.s32.totalorder %v2180_v16, 125  ;;  %p1823_p8 = pnand %p1822_p7, %p1816_p10 }
 0x15f   : > { %1425 = vrot.lane.b32.xlu1 %v1422_v33, %s1921_s20  ;;  %vm3403_vm14 = vmand %vm662_vm9, %vm663_vm10  ;;  %v827_v1 = vadd.s32 3, %v3355_v29 }
 0x160   : > { %vm745_vm15 = vcmp.ge.s32.totalorder %v744_v60, 0  ;;  %vm746_vm1 = vcmp.lt.s32.totalorder %v744_v60, 16 }
 0x161   : > { %vm3415_vm2 = vmand %vm745_vm15, %vm746_vm1  ;;  %vm828_vm5 = vcmp.ge.s32.totalorder %v827_v1, 0  ;;  %vm829_vm9 = vcmp.lt.s32.totalorder %v827_v1, 16 }
 0x162   : > { %vm3429_vm10 = vmand %vm828_vm5, %vm829_vm9 }
 0x164   : > { %v335_v13 = vpop.permute.xlu0 %334 }
 0x16c   : > { %v337_v31 = vpop.permute.xlu1 %336 }
 0x16d   : > { %v339_v56 = vsel %vm338_vm12, %v335_v13, %v337_v31  ;;  %v340_v51 = vsel %vm338_vm12, %v337_v31, %v335_v13 }
 0x16e   : > { %v347_v63 = vcombine.low %v340_v51, %v339_v56 }
 0x170   : > { %v354_v6 = vrot.slane %v347_v63, %v3329_v57 }
 0x172   : > { %v361_v22 = vrot.slane %v354_v6, %v3329_v57 }
 0x174   : > { %v363_v36 = vsel %vm3378_vm6, %v361_v22, 0.0 }
 0x17d   : > { %v418_v62 = vpop.permute.xlu0 %417 }
 0x17f   : > { %v420_v14 = vpop.permute.xlu1 %419 }
 0x180   : > { %v422_v11 = vsel %vm421_vm13, %v418_v62, %v420_v14  ;;  %v423_v50 = vsel %vm421_vm13, %v420_v14, %v418_v62 }
 0x181   : > { %v430_v25 = vcombine.low %v423_v50, %v422_v11 }
 0x183   : > { %v501_v35 = vpop.permute.xlu0 %500  ;;  %v437_v2 = vrot.slane %v430_v25, %v3329_v57 }
 0x185   : > { %v444_v21 = vrot.slane %v437_v2, %v3329_v57 }
 0x186   : > { %v503_v38 = vpop.permute.xlu1 %502 }
 0x187   : > { %v505_v30 = vsel %vm504_vm0, %v501_v35, %v503_v38  ;;  %v506_v0 = vsel %vm504_vm0, %v503_v38, %v501_v35  ;;  %v446_v4 = vsel %vm3368_vm3, %v444_v21, 0.0 }
 0x188   : > { %v513_v47 = vcombine.low %v506_v0, %v505_v30  ;;  %v447_v39 = vadd.f32 %v446_v4, %v363_v36 }
 0x18a   : > { %v520_v15 = vrot.slane %v513_v47, %v3329_v57 }
 0x18c   : > { %v527_v28 = vrot.slane %v520_v15, %v3329_v57 }
 0x18e   : > { %v655_v58 = vpop.permute.xlu0 %654  ;;  %v529_v24 = vsel %vm3385_vm7, %v527_v28, 0.0 }
 0x18f   : > { %v530_v61 = vadd.f32 %v529_v24, %v447_v39 }
 0x191   : > { %v601_v42 = vadd.f32 %v599_v52, %v530_v61 }
 0x194   : > { %v657_v10 = vpop.permute.xlu1 %656 }
 0x195   : > { %v659_v59 = vsel %vm658_vm8, %v655_v58, %v657_v10  ;;  %v660_v7 = vsel %vm658_vm8, %v657_v10, %v655_v58 }
 0x196   : > { %v667_v46 = vcombine.low %v659_v59, %v660_v7 }
 0x198   : > { %v738_v19 = vpop.permute.xlu0 %737  ;;  %v674_v41 = vrot.slane %v667_v46, %v3329_v57 }
 0x19a   : > { %v681_v45 = vrot.slane %v674_v41, %v3329_v57 }
 0x19c   : > { %v740_v23 = vpop.permute.xlu1 %739  ;;  %v683_v40 = vsel %vm3403_vm14, %v681_v45, 0.0 }
 0x19d   : > { %v742_v48 = vsel %vm741_vm11, %v738_v19, %v740_v23  ;;  %v743_v3 = vsel %vm741_vm11, %v740_v23, %v738_v19  ;;  %v684_v5 = vadd.f32 %v683_v40, %v601_v42 }
 0x19e   : > { %v750_v43 = vcombine.low %v742_v48, %v743_v3 }
 0x1a0   : > { %v757_v27 = vrot.slane %v750_v43, %v3329_v57 }
 0x1a1   : > { %v821_v37 = vpop.permute.xlu0 %820 }
 0x1a2   : > { %v764_v33 = vrot.slane %v757_v27, %v3329_v57 }
 0x1a4   : > { %v766_v32 = vsel %vm3415_vm2, %v764_v33, 0.0 }
 0x1a5   : > { %v767_v56 = vadd.f32 %v766_v32, %v684_v5 }
 0x1a8   : > { %v823_v52 = vpop.permute.xlu1 %822 }
 0x1a9   : > { %v825_v13 = vsel %vm824_vm4, %v821_v37, %v823_v52  ;;  %v826_v31 = vsel %vm824_vm4, %v823_v52, %v821_v37 }
 0x1aa   : > { %v833_v51 = vcombine.low %v825_v13, %v826_v31  ;;  %v963_v62 = vpop.permute.xlu0 %962 }
 0x1ac   : > { %v840_v44 = vrot.slane %v833_v51, %v3329_v57 }
 0x1ae   : > { %v965_v29 = vpop.permute.xlu1 %964  ;;  %v847_v11 = vrot.slane %v840_v44, %v3329_v57 }
 0x1af   : > { %v966_v14 = vsel %vm338_vm12, %v963_v62, %v965_v29  ;;  %v967_v54 = vsel %vm338_vm12, %v965_v29, %v963_v62 }
 0x1b0   : > { %v970_v50 = vcombine.low %v967_v54, %v966_v14  ;;  %v849_v6 = vsel %vm3429_vm10, %v847_v11, 0.0  ;;  %v1455_v11 = vld [vmem:[%s4091_s18] sm:$0xff] }
 0x1b1   : > { %v850_v20 = vadd.f32 %v849_v6, %v767_v56 }
 0x1b2   : > { %v1041_v25 = vpop.permute.xlu0 %1040  ;;  %v977_v35 = vrot.slane %v970_v50, %v3329_v57 }
 0x1b4   : > { %v984_v38 = vrot.slane %v977_v35, %v3329_v57 }
 0x1b5   : > { %v1043_v2 = vpop.permute.xlu1 %1042 }
 0x1b6   : > { %v1044_v21 = vsel %vm421_vm13, %v1041_v25, %v1043_v2  ;;  %v1045_v30 = vsel %vm421_vm13, %v1043_v2, %v1041_v25  ;;  %v986_v47 = vsel %vm3378_vm6, %v984_v38, 0.0 }
 0x1b7   : > { %v1048_v0 = vcombine.low %v1045_v30, %v1044_v21  ;;  %v987_v4 = vadd.f32 %v986_v47, %v850_v20 }
 0x1b8   : > { %v1119_v22 = vpop.permute.xlu0 %1118 }
 0x1b9   : > { %v1055_v15 = vrot.slane %v1048_v0, %v3329_v57 }
 0x1bb   : > { %v1062_v28 = vrot.slane %v1055_v15, %v3329_v57 }
 0x1bc   : > { %v1121_v36 = vpop.permute.xlu1 %1120 }
 0x1bd   : > { %v1122_v58 = vsel %vm504_vm0, %v1119_v22, %v1121_v36  ;;  %v1123_v39 = vsel %vm504_vm0, %v1121_v36, %v1119_v22  ;;  %v1064_v61 = vsel %vm3368_vm3, %v1062_v28, 0.0 }
 0x1be   : > { %v1126_v26 = vcombine.low %v1123_v39, %v1122_v58  ;;  %v1065_v10 = vadd.f32 %v1064_v61, %v987_v4 }
 0x1c0   : > { %v1268_v24 = vpop.permute.xlu0 %1267  ;;  %v1133_v17 = vrot.slane %v1126_v26, %v3329_v57 }
 0x1c2   : > { %v1140_v7 = vrot.slane %v1133_v17, %v3329_v57 }
 0x1c3   : > { %v1270_v59 = vpop.permute.xlu1 %1269 }
 0x1c4   : > { %v1271_v42 = vsel %vm658_vm8, %v1268_v24, %v1270_v59  ;;  %v1272_v46 = vsel %vm658_vm8, %v1270_v59, %v1268_v24  ;;  %v1142_v41 = vsel %vm3385_vm7, %v1140_v7, 0.0 }
 0x1c5   : > { %v1275_v19 = vcombine.low %v1271_v42, %v1272_v46  ;;  %v1143_v45 = vadd.f32 %v1142_v41, %v1065_v10 }
 0x1c7   : > { %v1282_v12 = vrot.slane %v1275_v19, %v3329_v57  ;;  %v1214_v48 = vadd.f32 %v1212_v49, %v1143_v45 }
 0x1c8   : > { %v1346_v60 = vpop.permute.xlu0 %1345 }
 0x1c9   : > { %v1289_v3 = vrot.slane %v1282_v12, %v3329_v57 }
 0x1cb   : > { %v1348_v23 = vpop.permute.xlu1 %1347  ;;  %v1291_v55 = vsel %vm3403_vm14, %v1289_v3, 0.0 }
 0x1cc   : > { %v1349_v40 = vsel %vm741_vm11, %v1346_v60, %v1348_v23  ;;  %v1350_v43 = vsel %vm741_vm11, %v1348_v23, %v1346_v60  ;;  %v1292_v27 = vadd.f32 %v1291_v55, %v1214_v48 }
 0x1cd   : > { %v1353_v5 = vcombine.low %v1349_v40, %v1350_v43 }
 0x1cf   : > { %v1424_v37 = vpop.permute.xlu0 %1423  ;;  %v1360_v1 = vrot.slane %v1353_v5, %v3329_v57 }
 0x1d1   : > { %v1426_v33 = vpop.permute.xlu1 %1425  ;;  %v1367_v18 = vrot.slane %v1360_v1, %v3329_v57 }
 0x1d2   : > { %v1427_v49 = vsel %vm824_vm4, %v1424_v37, %v1426_v33  ;;  %v1428_v52 = vsel %vm824_vm4, %v1426_v33, %v1424_v37 }
 0x1d3   : > { %v1431_v32 = vcombine.low %v1427_v49, %v1428_v52  ;;  %v1369_v34 = vsel %vm3415_vm2, %v1367_v18, 0.0 }
 0x1d4   : > { %v1370_v13 = vadd.f32 %v1369_v34, %v1292_v27 }
 0x1d5   : > { %v1438_v31 = vrot.slane %v1431_v32, %v3329_v57 }
 0x1d7   : > { %v1445_v56 = vrot.slane %v1438_v31, %v3329_v57 }
 0x1d9   : > { %v1447_v51 = vsel %vm3429_vm10, %v1445_v56, 0.0 }
 0x1da   : > { %v1448_v62 = vadd.f32 %v1447_v51, %v1370_v13 }
 0x1dc   : > { %v1676_v44 = vmul.f32 -1.442695, %v1448_v62 }
 0x1de   : > { %1769 = vpow2.f32 %v1676_v44 }
 0x1e8   : > { %v1770_v16 = vpop.eup %1769 }
 0x1e9   : > { %v1452_v29 = vadd.f32 1.0, %v1770_v16 }
 0x1eb   : > { %1771 = vrcp.f32 %v1452_v29 }
 0x1f5   : > { %v1772_v53 = vpop.eup %1771 }
 0x1f6   : > { %v1460_v14 = vrot.slane %v1772_v53, %v2082_v8  ;;  %v1464_v54 = vrot.slane %v1772_v53, %v2085_v9 }
 0x1f8   : > { %v1465_v57 = vcombine.low %v1460_v14, %v1464_v54 }
 0x1fa   : > { %v1467_v63 = vmul.f32 %v1465_v57, %v1455_v11 }
 0x1fc   : > { %1468 = vst [vmem:[%s4093_s30] sm:$0xff] %v1467_v63 }
 0x1fd   : > { %1826 = shalt.err (!%p1823_p8)
}
 0x1fe   : > { %s1827_s8 = scalar_lea.hbm %s3495_s0, 128  ;;  %s1831_s17 = scalar_lea.hbm %s4097_s9, 256 }
 0x1ff   : > { %p1828_p11 = scmp.ne.s32.totalorder %s3495_s0, %s1827_s8  ;;  %p1832_p4 = scmp.lt.u32.totalorder %s3495_s0, %s4097_s9 }
 0x200   : > { %p1833_p6 = scmp.lt.u32.totalorder %s1831_s17, %s1827_s8  ;;  %p1835_p0 = scmp.lt.u32.totalorder %s1827_s8, %s3495_s0 }
 0x201   : > { %p1829_p12 = pnand %p1828_p11, %p4098_p1 }
 0x202   : > { %p1834_p9 = por %p1833_p6, %p1832_p4 }
 0x203   : > { %p1830_p3 = pneg %p1829_p12 }
 0x204   : > { %p1836_p2 = por %p1835_p0, %p1834_p9 }
 0x206   : > { %p1837_p10 = pnand %p1836_p2, %p1830_p3 }
 0x208   : > { %1840 = shalt.err (!%p1837_p10)
}
 0x209   : > { %1687 = dma.vmem_to_hbm [thread:$0]  (%p4098_p1), %s3497_s22, 128, %s3495_s0, %s1470_s16  }
 0x20a PF: > { %s4099_s19 = sld [smem:[#allocation11_spill]]  ;;  %s4100_s2 = sld [smem:[#allocation19_spill]] }
 0x20b   : > { %s4101_s21 = sld [smem:[#allocation14_spill]] }
 0x210   : > { %s1496_s28 = sand.u32 1, %s4099_s19   ;;  %p4102_p13 = scmp.ne.s32.totalorder %s4100_s2, 0 }
 0x211   : > { %p4103_p5 = scmp.ge.s32.totalorder %s4101_s21, 2  ;;  %s1497_s4 = scalar_lea.sflag [#allocation6], %s1496_s28 }
 0x213   : > { %p1694_p7 = pnand %p4103_p5, %p4102_p13 }
 0x215   : > { %1876 = dma.done.wait (!%p1694_p7), %s1497_s4, 128  }
 0x216   : > { %1878 = vsyncadd (!%p1694_p7), %s1497_s4, 4294967168  ;;  %s4104_s25 = sld [smem:[#allocation16_spill]]  ;;  %s4105_s22 = sld [smem:[#allocation12_spill]] }
 0x217   : > { %s4106_s23 = sld [smem:[#allocation13_spill]]  ;;  %s4107_s24 = sld [smem:[#allocation17_spill]] }
 0x21c   : > { %p20_p8 = scmp.ge.s32.totalorder %s4104_s25, 4  }
 0x21e   :  { %22 = sbr.rel (!%p20_p8) target bundleno = 18 (0x12), region = 92 }
 0x225   :  { %1502 = vsyncpa [#allocation5], 1 }
 0x226   :  { %1504 = vsyncpa [#allocation5 + $0x1], 1 }
 0x227   :  { %1505 = vsyncpa [#allocation6], 1 }
 0x228   :  { %1507 = vsyncpa [#allocation6 + $0x1], 1 }

</bundles_post_ra>
